<compile_context>
chip_gen: v7x
topology: tpu7x:2x2x1
jax: 0.10.0
libtpu: 0.0.40
codegen_flags: <defaults>
</compile_context>

<pallas_src>
import functools
import math
from dataclasses import dataclass

import jax
import jax.numpy as jnp
from jax.experimental import pallas as pl
from jax.experimental.pallas import tpu as pltpu


# ----------------------------- config ---------------------------------------

@dataclass
class GPTConfig:
    block_size: int = 16
    vocab_size: int = 128
    n_layer: int = 2
    n_head: int = 4
    n_embd: int = 64


# ----------------------------- in-kernel helpers -----------------------------

def _layernorm_f32(x, g, b, eps=1e-5):
    mu = jnp.mean(x, axis=-1, keepdims=True)
    xc = x - mu
    var = jnp.mean(xc * xc, axis=-1, keepdims=True)
    return xc * jax.lax.rsqrt(var + eps) * g + b


def _gelu_tanh(x):
    # GELU, tanh approximation (matches nn.GELU(approximate='tanh'))
    return 0.5 * x * (1.0 + jnp.tanh(0.7978845608028654 * (x + 0.044715 * x * x * x)))


# ----------------------------- fused transformer block kernel ----------------

def block_kernel(x_ref,
                 ln1_g_ref, ln1_b_ref, attn_w_ref, attn_b_ref,
                 proj_w_ref, proj_b_ref,
                 ln2_g_ref, ln2_b_ref, fc_w_ref, fc_b_ref,
                 mlp_w_ref, mlp_b_ref,
                 o_ref,
                 q_heads_ref, k_heads_ref, v_heads_ref, y_ref,
                 *, n_head, seq_len, batch_block):
    # One grid step == `batch_block` batch elements, flattened to R = Bb*T rows.
    H, T, Bb = n_head, seq_len, batch_block
    x = x_ref[...].astype(jnp.float32)                     # (R, C) f32 residual
    R, C = x.shape
    hd = C // H
    scale = 1.0 / math.sqrt(hd)

    # ---- attention: LN1 -> QKV (bf16) -> head-batched SDPA -> proj -> +res ----
    h = _layernorm_f32(x, ln1_g_ref[...], ln1_b_ref[...])
    qkv = (jnp.dot(h.astype(jnp.bfloat16), attn_w_ref[...],
                   preferred_element_type=jnp.float32)
           + attn_b_ref[...]).astype(jnp.bfloat16)         # (R, 3C) bf16

    # One upfront head relayout into VMEM scratch (static slices) so the
    # attention matmuls run head-batched on the MXU with bf16 operands.
    for b in range(Bb):
        r0 = b * T
        for hh in range(H):
            dst = b * H + hh
            q_heads_ref[dst] = qkv[r0:r0 + T, hh * hd:(hh + 1) * hd]
            k_heads_ref[dst] = qkv[r0:r0 + T, C + hh * hd:C + (hh + 1) * hd]
            v_heads_ref[dst] = qkv[r0:r0 + T, 2 * C + hh * hd:2 * C + (hh + 1) * hd]

    qh = q_heads_ref[...]                                  # (Bb*H, T, hd) bf16
    kh = k_heads_ref[...]
    vh = v_heads_ref[...]

    s = jnp.einsum('bqd,bkd->bqk', qh, kh,
                   preferred_element_type=jnp.float32) * scale    # (Bb*H, T, T) f32
    row = jax.lax.broadcasted_iota(jnp.int32, (T, T), 0)
    col = jax.lax.broadcasted_iota(jnp.int32, (T, T), 1)
    causal = (col <= row)[None]                            # (1, T, T) bool
    s = jnp.where(causal, s, jnp.float32(-1e30))           # mask/softmax stay f32
    m = jnp.max(s, axis=-1, keepdims=True)
    p = jnp.exp(s - m)
    inv = pl.reciprocal(jnp.sum(p, axis=-1, keepdims=True), approx=True)
    pv = jnp.einsum('bqk,bkd->bqd', (p * inv).astype(jnp.bfloat16), vh,
                    preferred_element_type=jnp.float32)    # (Bb*H, T, hd) f32
    pv = pv.astype(jnp.bfloat16)

    # Head merge: write each head's pv to its static lane offset, then ONE
    # (R, C) @ (C, C) projection (bf16 feed, f32 accumulate).
    for b in range(Bb):
        r0 = b * T
        for hh in range(H):
            y_ref[r0:r0 + T, hh * hd:(hh + 1) * hd] = pv[b * H + hh]

    attn = jnp.dot(y_ref[...], proj_w_ref[...],
                   preferred_element_type=jnp.float32) + proj_b_ref[...]
    x = x + attn                                           # residual (f32)

    # ---- MLP: LN2 -> fc + GELU -> proj -> +res ----
    h = _layernorm_f32(x, ln2_g_ref[...], ln2_b_ref[...])
    h = jnp.dot(h.astype(jnp.bfloat16), fc_w_ref[...],
                preferred_element_type=jnp.float32) + fc_b_ref[...]
    h = _gelu_tanh(h)
    h = jnp.dot(h.astype(jnp.bfloat16), mlp_w_ref[...],
                preferred_element_type=jnp.float32) + mlp_b_ref[...]
    o_ref[...] = (x + h).astype(o_ref.dtype)               # bf16 out


def _pick_batch_block(B, T, H, max_rows=2048, max_heads=64):
    # Choose how many batch elements each grid step processes.
    for cand in range(B, 0, -1):
        if B % cand:
            continue
        if cand * T > max_rows or cand * H > max_heads:
            continue
        if cand != B and (cand * T) % 8:
            continue  # keep the row-block second-minor dim 8-aligned
        return cand
    return B


def pallas_transformer_block(x2d, p, *, n_head, seq_len, batch_block):
    R_total, C = x2d.shape
    H = n_head
    hd = C // H
    Rb = batch_block * seq_len

    def wspec(a):
        # Whole-array block with a constant block index: stays VMEM-resident.
        return pl.BlockSpec(a.shape, lambda i, nd=a.ndim: (0,) * nd)

    x_spec = pl.BlockSpec((Rb, C), lambda i: (i, 0))
    args = (x2d, p["ln1_g"], p["ln1_b"], p["attn_w"], p["attn_b"],
            p["attn_proj_w"], p["attn_proj_b"],
            p["ln2_g"], p["ln2_b"], p["fc_w"], p["fc_b"],
            p["mlp_proj_w"], p["mlp_proj_b"])
    in_specs = [x_spec] + [wspec(a) for a in args[1:]]

    # Raise the scoped VMEM limit only when the resident-weight design would
    # exceed the conservative default (16 MiB on v5e); toy configs pass None.
    weight_bytes = sum(int(a.size) * a.dtype.itemsize for a in args[1:])
    act_bytes = (Rb * C * 10                      # x block / residual / LN tmp
                 + Rb * 3 * C * 2                 # qkv bf16
                 + 3 * batch_block * H * seq_len * hd * 2   # q/k/v head scratch
                 + batch_block * H * seq_len * seq_len * 4  # scores f32
                 + Rb * 4 * C * 4                 # mlp hidden f32
                 + Rb * C * 2)                    # merged-head scratch
    est = 2 * weight_bytes + 2 * act_bytes + (2 << 20)
    extra = {}
    if est > (16 << 20):
        extra["vmem_limit_bytes"] = int(min(est, 100 << 20))

    return pl.pallas_call(
        functools.partial(block_kernel, n_head=H, seq_len=seq_len,
                          batch_block=batch_block),
        out_shape=jax.ShapeDtypeStruct((R_total, C), jnp.bfloat16),
        grid=(R_total // Rb,),
        in_specs=in_specs,
        out_specs=x_spec,
        scratch_shapes=[
            pltpu.VMEM((batch_block * H, seq_len, hd), jnp.bfloat16),  # q heads
            pltpu.VMEM((batch_block * H, seq_len, hd), jnp.bfloat16),  # k heads
            pltpu.VMEM((batch_block * H, seq_len, hd), jnp.bfloat16),  # v heads
            pltpu.VMEM((Rb, C), jnp.bfloat16),                         # merged pv
        ],
        compiler_params=pltpu.CompilerParams(
            dimension_semantics=("parallel",), **extra),
    )(*args)


# ----------------------------- fused final LN + lm_head ----------------------

def lnf_lm_head_kernel(x_ref, g_ref, b_ref, w_ref, o_ref, xn_ref):
    # LayerNorm of the row tile is computed ONCE (inner vocab axis j == 0) and
    # cached in VMEM; every vocab tile then only does the bf16 matmul.
    @pl.when(pl.program_id(1) == 0)
    def _():
        x = x_ref[...].astype(jnp.float32)
        xn_ref[...] = _layernorm_f32(x, g_ref[...], b_ref[...]).astype(jnp.bfloat16)

    o_ref[...] = jnp.dot(xn_ref[...], w_ref[...],
                         preferred_element_type=jnp.float32).astype(o_ref.dtype)


def pallas_lnf_lm_head(x2d, g, b, w_t, *, tm_max=1024, tn_max=512):
    M, C = x2d.shape
    N = w_t.shape[1]
    tm = M if M <= tm_max else tm_max
    tn = N if N <= tn_max else tn_max
    grid = (pl.cdiv(M, tm), pl.cdiv(N, tn))
    return pl.pallas_call(
        lnf_lm_head_kernel,
        out_shape=jax.ShapeDtypeStruct((M, N), jnp.float32),
        grid=grid,
        in_specs=[pl.BlockSpec((tm, C), lambda i, j: (i, 0)),
                  pl.BlockSpec((1, C), lambda i, j: (0, 0)),
                  pl.BlockSpec((1, C), lambda i, j: (0, 0)),
                  pl.BlockSpec((C, tn), lambda i, j: (0, j))],
        out_specs=pl.BlockSpec((tm, tn), lambda i, j: (i, j)),
        scratch_shapes=[pltpu.VMEM((tm, C), jnp.bfloat16)],
        compiler_params=pltpu.CompilerParams(
            dimension_semantics=("parallel", "arbitrary")),
    )(x2d, g, b, w_t)


# ----------------------------- model -----------------------------------------

def init_params(key, cfg: GPTConfig):
    std = 0.02
    proj_std = 0.02 * (2 * cfg.n_layer) ** -0.5
    C, V = cfg.n_embd, cfg.vocab_size

    def nxt():
        nonlocal key
        key, sub = jax.random.split(key)
        return sub

    wte = std * jax.random.normal(nxt(), (V, C), jnp.float32)
    params = {
        "wte": wte,                                        # embedding table (f32)
        "wte_T": wte.T.astype(jnp.bfloat16),               # tied lm_head weight, transposed once
        "wpe": std * jax.random.normal(nxt(), (cfg.block_size, C), jnp.float32),
        "ln_f_g": jnp.ones((1, C), jnp.float32),
        "ln_f_b": jnp.zeros((1, C), jnp.float32),
        "blocks": [],
    }
    for _ in range(cfg.n_layer):
        # NOTE: matmul weights intentionally stored in bf16 (MXU feed); biases
        # and LN params stay f32.
        blk = {
            "ln1_g": jnp.ones((1, C), jnp.float32),
            "ln1_b": jnp.zeros((1, C), jnp.float32),
            "attn_w": (std * jax.random.normal(nxt(), (C, 3 * C), jnp.float32)).astype(jnp.bfloat16),
            "attn_b": jnp.zeros((1, 3 * C), jnp.float32),
            "attn_proj_w": (proj_std * jax.random.normal(nxt(), (C, C), jnp.float32)).astype(jnp.bfloat16),
            "attn_proj_b": jnp.zeros((1, C), jnp.float32),
            "ln2_g": jnp.ones((1, C), jnp.float32),
            "ln2_b": jnp.zeros((1, C), jnp.float32),
            "fc_w": (std * jax.random.normal(nxt(), (C, 4 * C), jnp.float32)).astype(jnp.bfloat16),
            "fc_b": jnp.zeros((1, 4 * C), jnp.float32),
            "mlp_proj_w": (proj_std * jax.random.normal(nxt(), (4 * C, C), jnp.float32)).astype(jnp.bfloat16),
            "mlp_proj_b": jnp.zeros((1, C), jnp.float32),
        }
        params["blocks"].append(blk)
    return params


def gpt_forward(params, idx, cfg: GPTConfig):
    B, T = idx.shape
    assert T <= cfg.block_size
    C, H = cfg.n_embd, cfg.n_head

    # embedding gathers: plain JAX glue (no clean Pallas equivalent at this size)
    x = params["wte"][idx] + params["wpe"][:T][None]       # (B, T, C) f32
    x2d = x.reshape(B * T, C).astype(jnp.bfloat16)         # bf16 residual stream

    bb = _pick_batch_block(B, T, H)
    for blk in params["blocks"]:
        x2d = pallas_transformer_block(x2d, blk, n_head=H, seq_len=T, batch_block=bb)

    logits = pallas_lnf_lm_head(x2d, params["ln_f_g"], params["ln_f_b"],
                                params["wte_T"])
    return logits.reshape(B, T, cfg.vocab_size)


# ----------------------------- main ------------------------------------------

if __name__ == "__main__":
    cfg = GPTConfig(block_size=16, vocab_size=128, n_layer=2, n_head=4, n_embd=64)
    key = jax.random.PRNGKey(0)
    pkey, ikey = jax.random.split(key)
    params = init_params(pkey, cfg)

    B, T = 2, 8
    idx = jax.random.randint(ikey, (B, T), 0, cfg.vocab_size, dtype=jnp.int32)

    logits = jax.jit(functools.partial(gpt_forward, cfg=cfg))(params, idx)
    logits = jax.block_until_ready(logits)

    assert logits.shape == (B, T, cfg.vocab_size), logits.shape
    assert bool(jnp.all(jnp.isfinite(logits)))
    print("KERNEL_OK")
</pallas_src>

<mosaic_0001>
module attributes {stable_mosaic.version = 11 : i64} {
  func.func @lnf_lm_head_kernel(%arg0: i32, %arg1: i32, %arg2: memref<16x64xbf16, #tpu.memory_space<vmem>>, %arg3: memref<1x64xf32, #tpu.memory_space<vmem>>, %arg4: memref<1x64xf32, #tpu.memory_space<vmem>>, %arg5: memref<64x128xbf16, #tpu.memory_space<vmem>>, %arg6: memref<16x128xf32, #tpu.memory_space<vmem>>, %arg7: memref<16x64xbf16, #tpu.memory_space<vmem>>) attributes {dimension_semantics = [#tpu.dimension_semantics<parallel>, #tpu.dimension_semantics<arbitrary>], iteration_bounds = array<i64: 1, 1>, scalar_prefetch = 0 : i64, scratch_operands = 1 : i64, tpu.core_type = #tpu.core_type<tc>, window_params = [{transform_indices = @transform_0, window_bounds = array<i64: 16, 64>}, {pipeline_mode = #tpu.pipeline_mode<synchronous>, transform_indices = @transform_1, window_bounds = array<i64: 1, 64>}, {pipeline_mode = #tpu.pipeline_mode<synchronous>, transform_indices = @transform_2, window_bounds = array<i64: 1, 64>}, {transform_indices = @transform_3, window_bounds = array<i64: 64, 128>}, {transform_indices = @transform_4, window_bounds = array<i64: 16, 128>}]} {
    %c0_i32 = arith.constant 0 : i32
    %0 = arith.cmpi eq, %arg1, %c0_i32 : i32
    %1 = arith.extui %0 : i1 to i32
    %c0_i32_0 = arith.constant 0 : i32
    %2 = arith.cmpi ne, %1, %c0_i32_0 : i32
    scf.if %2 {
      %c0_6 = arith.constant 0 : index
      %c0_7 = arith.constant 0 : index
      %7 = vector.load %arg2[%c0_6, %c0_7] : memref<16x64xbf16, #tpu.memory_space<vmem>>, vector<16x64xbf16>
      %8 = arith.extf %7 : vector<16x64xbf16> to vector<16x64xf32>
      %c0_8 = arith.constant 0 : index
      %c0_9 = arith.constant 0 : index
      %9 = vector.load %arg3[%c0_8, %c0_9] : memref<1x64xf32, #tpu.memory_space<vmem>>, vector<1x64xf32>
      %c0_10 = arith.constant 0 : index
      %c0_11 = arith.constant 0 : index
      %10 = vector.load %arg4[%c0_10, %c0_11] : memref<1x64xf32, #tpu.memory_space<vmem>>, vector<1x64xf32>
      %cst_12 = arith.constant dense<0.000000e+00> : vector<16xf32>
      %11 = vector.multi_reduction <add>, %8, %cst_12 [1] : vector<16x64xf32> to vector<16xf32>
      %12 = vector.shape_cast %11 : vector<16xf32> to vector<16x1xf32>
      %cst_13 = arith.constant 6.400000e+01 : f32
      %13 = vector.broadcast %cst_13 : f32 to vector<16x1xf32>
      %14 = arith.divf %12, %13 : vector<16x1xf32>
      %15 = vector.broadcast %14 : vector<16x1xf32> to vector<16x64xf32>
      %16 = arith.subf %8, %15 : vector<16x64xf32>
      %17 = arith.mulf %16, %16 : vector<16x64xf32>
      %cst_14 = arith.constant dense<0.000000e+00> : vector<16xf32>
      %18 = vector.multi_reduction <add>, %17, %cst_14 [1] : vector<16x64xf32> to vector<16xf32>
      %19 = vector.shape_cast %18 : vector<16xf32> to vector<16x1xf32>
      %cst_15 = arith.constant 6.400000e+01 : f32
      %20 = vector.broadcast %cst_15 : f32 to vector<16x1xf32>
      %21 = arith.divf %19, %20 : vector<16x1xf32>
      %cst_16 = arith.constant 9.99999974E-6 : f32
      %22 = vector.broadcast %cst_16 : f32 to vector<16x1xf32>
      %23 = arith.addf %21, %22 : vector<16x1xf32>
      %24 = math.rsqrt %23 : vector<16x1xf32>
      %25 = vector.broadcast %24 : vector<16x1xf32> to vector<16x64xf32>
      %26 = arith.mulf %16, %25 : vector<16x64xf32>
      %27 = vector.broadcast %9 : vector<1x64xf32> to vector<16x64xf32>
      %28 = arith.mulf %26, %27 : vector<16x64xf32>
      %29 = vector.broadcast %10 : vector<1x64xf32> to vector<16x64xf32>
      %30 = arith.addf %28, %29 : vector<16x64xf32>
      %31 = arith.truncf %30 : vector<16x64xf32> to vector<16x64xbf16>
      %c0_17 = arith.constant 0 : index
      %c0_18 = arith.constant 0 : index
      %32 = vector.load %arg7[%c0_17, %c0_18] : memref<16x64xbf16, #tpu.memory_space<vmem>>, vector<16x64xbf16>
      tpu.vector_store %arg7[%c0_17, %c0_18], %31 {strides = array<i32>} : memref<16x64xbf16, #tpu.memory_space<vmem>>, vector<16x64xbf16>,
    } else {
    }
    %c0 = arith.constant 0 : index
    %c0_1 = arith.constant 0 : index
    %3 = vector.load %arg7[%c0, %c0_1] : memref<16x64xbf16, #tpu.memory_space<vmem>>, vector<16x64xbf16>
    %c0_2 = arith.constant 0 : index
    %c0_3 = arith.constant 0 : index
    %4 = vector.load %arg5[%c0_2, %c0_3] : memref<64x128xbf16, #tpu.memory_space<vmem>>, vector<64x128xbf16>
    %cst = arith.constant dense<0.000000e+00> : vector<16x128xf32>
    %5 = tpu.matmul %3, %4, %cst {dimension_numbers = #tpu.dot_dimension_numbers<[1], [0], [0], [1], [0, 0, 1, 1], [], []>} : vector<16x64xbf16>, vector<64x128xbf16>, vector<16x128xf32> -> vector<16x128xf32>
    %c0_4 = arith.constant 0 : index
    %c0_5 = arith.constant 0 : index
    %6 = vector.load %arg6[%c0_4, %c0_5] : memref<16x128xf32, #tpu.memory_space<vmem>>, vector<16x128xf32>
    tpu.vector_store %arg6[%c0_4, %c0_5], %5 {strides = array<i32>} : memref<16x128xf32, #tpu.memory_space<vmem>>, vector<16x128xf32>,
    return
  }
  func.func @transform_0(%arg0: i32, %arg1: i32) -> (i32, i32) {
    %c0_i32 = arith.constant 0 : i32
    %c0_i32_0 = arith.constant 0 : i32
    return %arg0, %c0_i32 : i32, i32
  }
  func.func @transform_1(%arg0: i32, %arg1: i32) -> (i32, i32) {
    %c0_i32 = arith.constant 0 : i32
    %c0_i32_0 = arith.constant 0 : i32
    %c0_i32_1 = arith.constant 0 : i32
    return %c0_i32, %c0_i32_0 : i32, i32
  }
  func.func @transform_2(%arg0: i32, %arg1: i32) -> (i32, i32) {
    %c0_i32 = arith.constant 0 : i32
    %c0_i32_0 = arith.constant 0 : i32
    %c0_i32_1 = arith.constant 0 : i32
    return %c0_i32, %c0_i32_0 : i32, i32
  }
  func.func @transform_3(%arg0: i32, %arg1: i32) -> (i32, i32) {
    %c0_i32 = arith.constant 0 : i32
    %c0_i32_0 = arith.constant 0 : i32
    return %c0_i32, %arg1 : i32, i32
  }
  func.func @transform_4(%arg0: i32, %arg1: i32) -> (i32, i32) {
    %c0_i32 = arith.constant 0 : i32
    return %arg0, %arg1 : i32, i32
  }
}

module attributes {stable_mosaic.version = 11 : i64} {
  func.func @block_kernel(%arg0: i32, %arg1: memref<16x64xbf16, #tpu.memory_space<vmem>>, %arg2: memref<1x64xf32, #tpu.memory_space<vmem>>, %arg3: memref<1x64xf32, #tpu.memory_space<vmem>>, %arg4: memref<64x192xbf16, #tpu.memory_space<vmem>>, %arg5: memref<1x192xf32, #tpu.memory_space<vmem>>, %arg6: memref<64x64xbf16, #tpu.memory_space<vmem>>, %arg7: memref<1x64xf32, #tpu.memory_space<vmem>>, %arg8: memref<1x64xf32, #tpu.memory_space<vmem>>, %arg9: memref<1x64xf32, #tpu.memory_space<vmem>>, %arg10: memref<64x256xbf16, #tpu.memory_space<vmem>>, %arg11: memref<1x256xf32, #tpu.memory_space<vmem>>, %arg12: memref<256x64xbf16, #tpu.memory_space<vmem>>, %arg13: memref<1x64xf32, #tpu.memory_space<vmem>>, %arg14: memref<16x64xbf16, #tpu.memory_space<vmem>>, %arg15: memref<8x8x16xbf16, #tpu.memory_space<vmem>>, %arg16: memref<8x8x16xbf16, #tpu.memory_space<vmem>>, %arg17: memref<8x8x16xbf16, #tpu.memory_space<vmem>>, %arg18: memref<16x64xbf16, #tpu.memory_space<vmem>>) attributes {dimension_semantics = [#tpu.dimension_semantics<parallel>], iteration_bounds = array<i64: 1>, scalar_prefetch = 0 : i64, scratch_operands = 4 : i64, tpu.core_type = #tpu.core_type<tc>, window_params = [{transform_indices = @transform_0, window_bounds = array<i64: 16, 64>}, {pipeline_mode = #tpu.pipeline_mode<synchronous>, transform_indices = @transform_1, window_bounds = array<i64: 1, 64>}, {pipeline_mode = #tpu.pipeline_mode<synchronous>, transform_indices = @transform_2, window_bounds = array<i64: 1, 64>}, {pipeline_mode = #tpu.pipeline_mode<synchronous>, transform_indices = @transform_3, window_bounds = array<i64: 64, 192>}, {pipeline_mode = #tpu.pipeline_mode<synchronous>, transform_indices = @transform_4, window_bounds = array<i64: 1, 192>}, {pipeline_mode = #tpu.pipeline_mode<synchronous>, transform_indices = @transform_5, window_bounds = array<i64: 64, 64>}, {pipeline_mode = #tpu.pipeline_mode<synchronous>, transform_indices = @transform_6, window_bounds = array<i64: 1, 64>}, {pipeline_mode = #tpu.pipeline_mode<synchronous>, transform_indices = @transform_7, window_bounds = array<i64: 1, 64>}, {pipeline_mode = #tpu.pipeline_mode<synchronous>, transform_indices = @transform_8, window_bounds = array<i64: 1, 64>}, {pipeline_mode = #tpu.pipeline_mode<synchronous>, transform_indices = @transform_9, window_bounds = array<i64: 64, 256>}, {pipeline_mode = #tpu.pipeline_mode<synchronous>, transform_indices = @transform_10, window_bounds = array<i64: 1, 256>}, {pipeline_mode = #tpu.pipeline_mode<synchronous>, transform_indices = @transform_11, window_bounds = array<i64: 256, 64>}, {pipeline_mode = #tpu.pipeline_mode<synchronous>, transform_indices = @transform_12, window_bounds = array<i64: 1, 64>}, {transform_indices = @transform_13, window_bounds = array<i64: 16, 64>}]} {
    %c0 = arith.constant 0 : index
    %c0_0 = arith.constant 0 : index
    %0 = vector.load %arg1[%c0, %c0_0] : memref<16x64xbf16, #tpu.memory_space<vmem>>, vector<16x64xbf16>
    %1 = arith.extf %0 : vector<16x64xbf16> to vector<16x64xf32>
    %c0_1 = arith.constant 0 : index
    %c0_2 = arith.constant 0 : index
    %2 = vector.load %arg2[%c0_1, %c0_2] : memref<1x64xf32, #tpu.memory_space<vmem>>, vector<1x64xf32>
    %c0_3 = arith.constant 0 : index
    %c0_4 = arith.constant 0 : index
    %3 = vector.load %arg3[%c0_3, %c0_4] : memref<1x64xf32, #tpu.memory_space<vmem>>, vector<1x64xf32>
    %cst = arith.constant dense<0.000000e+00> : vector<16xf32>
    %4 = vector.multi_reduction <add>, %1, %cst [1] : vector<16x64xf32> to vector<16xf32>
    %5 = vector.shape_cast %4 : vector<16xf32> to vector<16x1xf32>
    %cst_5 = arith.constant 6.400000e+01 : f32
    %6 = vector.broadcast %cst_5 : f32 to vector<16x1xf32>
    %7 = arith.divf %5, %6 : vector<16x1xf32>
    %8 = vector.broadcast %7 : vector<16x1xf32> to vector<16x64xf32>
    %9 = arith.subf %1, %8 : vector<16x64xf32>
    %10 = arith.mulf %9, %9 : vector<16x64xf32>
    %cst_6 = arith.constant dense<0.000000e+00> : vector<16xf32>
    %11 = vector.multi_reduction <add>, %10, %cst_6 [1] : vector<16x64xf32> to vector<16xf32>
    %12 = vector.shape_cast %11 : vector<16xf32> to vector<16x1xf32>
    %cst_7 = arith.constant 6.400000e+01 : f32
    %13 = vector.broadcast %cst_7 : f32 to vector<16x1xf32>
    %14 = arith.divf %12, %13 : vector<16x1xf32>
    %cst_8 = arith.constant 9.99999974E-6 : f32
    %15 = vector.broadcast %cst_8 : f32 to vector<16x1xf32>
    %16 = arith.addf %14, %15 : vector<16x1xf32>
    %17 = math.rsqrt %16 : vector<16x1xf32>
    %18 = vector.broadcast %17 : vector<16x1xf32> to vector<16x64xf32>
    %19 = arith.mulf %9, %18 : vector<16x64xf32>
    %20 = vector.broadcast %2 : vector<1x64xf32> to vector<16x64xf32>
    %21 = arith.mulf %19, %20 : vector<16x64xf32>
    %22 = vector.broadcast %3 : vector<1x64xf32> to vector<16x64xf32>
    %23 = arith.addf %21, %22 : vector<16x64xf32>
    %24 = arith.truncf %23 : vector<16x64xf32> to vector<16x64xbf16>
    %c0_9 = arith.constant 0 : index
    %c0_10 = arith.constant 0 : index
    %25 = vector.load %arg4[%c0_9, %c0_10] : memref<64x192xbf16, #tpu.memory_space<vmem>>, vector<64x192xbf16>
    %cst_11 = arith.constant dense<0.000000e+00> : vector<16x192xf32>
    %26 = tpu.matmul %24, %25, %cst_11 {dimension_numbers = #tpu.dot_dimension_numbers<[1], [0], [0], [1], [0, 0, 1, 1], [], []>} : vector<16x64xbf16>, vector<64x192xbf16>, vector<16x192xf32> -> vector<16x192xf32>
    %c0_12 = arith.constant 0 : index
    %c0_13 = arith.constant 0 : index
    %27 = vector.load %arg5[%c0_12, %c0_13] : memref<1x192xf32, #tpu.memory_space<vmem>>, vector<1x192xf32>
    %28 = vector.broadcast %27 : vector<1x192xf32> to vector<16x192xf32>
    %29 = arith.addf %26, %28 : vector<16x192xf32>
    %30 = arith.truncf %29 : vector<16x192xf32> to vector<16x192xbf16>
    %31 = vector.extract_strided_slice %30 {offsets = [0, 0], sizes = [8, 16], strides = [1, 1]} : vector<16x192xbf16> to vector<8x16xbf16>
    %c0_14 = arith.constant 0 : index
    %c0_15 = arith.constant 0 : index
    %c0_16 = arith.constant 0 : index
    %32 = vector.load %arg15[%c0_14, %c0_15, %c0_16] : memref<8x8x16xbf16, #tpu.memory_space<vmem>>, vector<1x8x16xbf16>
    %33 = vector.shape_cast %32 : vector<1x8x16xbf16> to vector<8x16xbf16>
    %34 = vector.shape_cast %31 : vector<8x16xbf16> to vector<1x8x16xbf16>
    tpu.vector_store %arg15[%c0_14, %c0_15, %c0_16], %34 {strides = array<i32>} : memref<8x8x16xbf16, #tpu.memory_space<vmem>>, vector<1x8x16xbf16>,
    %35 = vector.extract_strided_slice %30 {offsets = [0, 64], sizes = [8, 16], strides = [1, 1]} : vector<16x192xbf16> to vector<8x16xbf16>
    %c0_17 = arith.constant 0 : index
    %c0_18 = arith.constant 0 : index
    %c0_19 = arith.constant 0 : index
    %36 = vector.load %arg16[%c0_17, %c0_18, %c0_19] : memref<8x8x16xbf16, #tpu.memory_space<vmem>>, vector<1x8x16xbf16>
    %37 = vector.shape_cast %36 : vector<1x8x16xbf16> to vector<8x16xbf16>
    %38 = vector.shape_cast %35 : vector<8x16xbf16> to vector<1x8x16xbf16>
    tpu.vector_store %arg16[%c0_17, %c0_18, %c0_19], %38 {strides = array<i32>} : memref<8x8x16xbf16, #tpu.memory_space<vmem>>, vector<1x8x16xbf16>,
    %39 = vector.extract_strided_slice %30 {offsets = [0, 128], sizes = [8, 16], strides = [1, 1]} : vector<16x192xbf16> to vector<8x16xbf16>
    %c0_20 = arith.constant 0 : index
    %c0_21 = arith.constant 0 : index
    %c0_22 = arith.constant 0 : index
    %40 = vector.load %arg17[%c0_20, %c0_21, %c0_22] : memref<8x8x16xbf16, #tpu.memory_space<vmem>>, vector<1x8x16xbf16>
    %41 = vector.shape_cast %40 : vector<1x8x16xbf16> to vector<8x16xbf16>
    %42 = vector.shape_cast %39 : vector<8x16xbf16> to vector<1x8x16xbf16>
    tpu.vector_store %arg17[%c0_20, %c0_21, %c0_22], %42 {strides = array<i32>} : memref<8x8x16xbf16, #tpu.memory_space<vmem>>, vector<1x8x16xbf16>,
    %43 = vector.extract_strided_slice %30 {offsets = [0, 16], sizes = [8, 16], strides = [1, 1]} : vector<16x192xbf16> to vector<8x16xbf16>
    %c1 = arith.constant 1 : index
    %c0_23 = arith.constant 0 : index
    %c0_24 = arith.constant 0 : index
    %44 = vector.load %arg15[%c1, %c0_23, %c0_24] : memref<8x8x16xbf16, #tpu.memory_space<vmem>>, vector<1x8x16xbf16>
    %45 = vector.shape_cast %44 : vector<1x8x16xbf16> to vector<8x16xbf16>
    %46 = vector.shape_cast %43 : vector<8x16xbf16> to vector<1x8x16xbf16>
    tpu.vector_store %arg15[%c1, %c0_23, %c0_24], %46 {strides = array<i32>} : memref<8x8x16xbf16, #tpu.memory_space<vmem>>, vector<1x8x16xbf16>,
    %47 = vector.extract_strided_slice %30 {offsets = [0, 80], sizes = [8, 16], strides = [1, 1]} : vector<16x192xbf16> to vector<8x16xbf16>
    %c1_25 = arith.constant 1 : index
    %c0_26 = arith.constant 0 : index
    %c0_27 = arith.constant 0 : index
    %48 = vector.load %arg16[%c1_25, %c0_26, %c0_27] : memref<8x8x16xbf16, #tpu.memory_space<vmem>>, vector<1x8x16xbf16>
    %49 = vector.shape_cast %48 : vector<1x8x16xbf16> to vector<8x16xbf16>
    %50 = vector.shape_cast %47 : vector<8x16xbf16> to vector<1x8x16xbf16>
    tpu.vector_store %arg16[%c1_25, %c0_26, %c0_27], %50 {strides = array<i32>} : memref<8x8x16xbf16, #tpu.memory_space<vmem>>, vector<1x8x16xbf16>,
    %51 = vector.extract_strided_slice %30 {offsets = [0, 144], sizes = [8, 16], strides = [1, 1]} : vector<16x192xbf16> to vector<8x16xbf16>
    %c1_28 = arith.constant 1 : index
    %c0_29 = arith.constant 0 : index
    %c0_30 = arith.constant 0 : index
    %52 = vector.load %arg17[%c1_28, %c0_29, %c0_30] : memref<8x8x16xbf16, #tpu.memory_space<vmem>>, vector<1x8x16xbf16>
    %53 = vector.shape_cast %52 : vector<1x8x16xbf16> to vector<8x16xbf16>
    %54 = vector.shape_cast %51 : vector<8x16xbf16> to vector<1x8x16xbf16>
    tpu.vector_store %arg17[%c1_28, %c0_29, %c0_30], %54 {strides = array<i32>} : memref<8x8x16xbf16, #tpu.memory_space<vmem>>, vector<1x8x16xbf16>,
    %55 = vector.extract_strided_slice %30 {offsets = [0, 32], sizes = [8, 16], strides = [1, 1]} : vector<16x192xbf16> to vector<8x16xbf16>
    %c2 = arith.constant 2 : index
    %c0_31 = arith.constant 0 : index
    %c0_32 = arith.constant 0 : index
    %56 = vector.load %arg15[%c2, %c0_31, %c0_32] : memref<8x8x16xbf16, #tpu.memory_space<vmem>>, vector<1x8x16xbf16>
    %57 = vector.shape_cast %56 : vector<1x8x16xbf16> to vector<8x16xbf16>
    %58 = vector.shape_cast %55 : vector<8x16xbf16> to vector<1x8x16xbf16>
    tpu.vector_store %arg15[%c2, %c0_31, %c0_32], %58 {strides = array<i32>} : memref<8x8x16xbf16, #tpu.memory_space<vmem>>, vector<1x8x16xbf16>,
    %59 = vector.extract_strided_slice %30 {offsets = [0, 96], sizes = [8, 16], strides = [1, 1]} : vector<16x192xbf16> to vector<8x16xbf16>
    %c2_33 = arith.constant 2 : index
    %c0_34 = arith.constant 0 : index
    %c0_35 = arith.constant 0 : index
    %60 = vector.load %arg16[%c2_33, %c0_34, %c0_35] : memref<8x8x16xbf16, #tpu.memory_space<vmem>>, vector<1x8x16xbf16>
    %61 = vector.shape_cast %60 : vector<1x8x16xbf16> to vector<8x16xbf16>
    %62 = vector.shape_cast %59 : vector<8x16xbf16> to vector<1x8x16xbf16>
    tpu.vector_store %arg16[%c2_33, %c0_34, %c0_35], %62 {strides = array<i32>} : memref<8x8x16xbf16, #tpu.memory_space<vmem>>, vector<1x8x16xbf16>,
    %63 = vector.extract_strided_slice %30 {offsets = [0, 160], sizes = [8, 16], strides = [1, 1]} : vector<16x192xbf16> to vector<8x16xbf16>
    %c2_36 = arith.constant 2 : index
    %c0_37 = arith.constant 0 : index
    %c0_38 = arith.constant 0 : index
    %64 = vector.load %arg17[%c2_36, %c0_37, %c0_38] : memref<8x8x16xbf16, #tpu.memory_space<vmem>>, vector<1x8x16xbf16>
    %65 = vector.shape_cast %64 : vector<1x8x16xbf16> to vector<8x16xbf16>
    %66 = vector.shape_cast %63 : vector<8x16xbf16> to vector<1x8x16xbf16>
    tpu.vector_store %arg17[%c2_36, %c0_37, %c0_38], %66 {strides = array<i32>} : memref<8x8x16xbf16, #tpu.memory_space<vmem>>, vector<1x8x16xbf16>,
    %67 = vector.extract_strided_slice %30 {offsets = [0, 48], sizes = [8, 16], strides = [1, 1]} : vector<16x192xbf16> to vector<8x16xbf16>
    %c3 = arith.constant 3 : index
    %c0_39 = arith.constant 0 : index
    %c0_40 = arith.constant 0 : index
    %68 = vector.load %arg15[%c3, %c0_39, %c0_40] : memref<8x8x16xbf16, #tpu.memory_space<vmem>>, vector<1x8x16xbf16>
    %69 = vector.shape_cast %68 : vector<1x8x16xbf16> to vector<8x16xbf16>
    %70 = vector.shape_cast %67 : vector<8x16xbf16> to vector<1x8x16xbf16>
    tpu.vector_store %arg15[%c3, %c0_39, %c0_40], %70 {strides = array<i32>} : memref<8x8x16xbf16, #tpu.memory_space<vmem>>, vector<1x8x16xbf16>,
    %71 = vector.extract_strided_slice %30 {offsets = [0, 112], sizes = [8, 16], strides = [1, 1]} : vector<16x192xbf16> to vector<8x16xbf16>
    %c3_41 = arith.constant 3 : index
    %c0_42 = arith.constant 0 : index
    %c0_43 = arith.constant 0 : index
    %72 = vector.load %arg16[%c3_41, %c0_42, %c0_43] : memref<8x8x16xbf16, #tpu.memory_space<vmem>>, vector<1x8x16xbf16>
    %73 = vector.shape_cast %72 : vector<1x8x16xbf16> to vector<8x16xbf16>
    %74 = vector.shape_cast %71 : vector<8x16xbf16> to vector<1x8x16xbf16>
    tpu.vector_store %arg16[%c3_41, %c0_42, %c0_43], %74 {strides = array<i32>} : memref<8x8x16xbf16, #tpu.memory_space<vmem>>, vector<1x8x16xbf16>,
    %75 = vector.extract_strided_slice %30 {offsets = [0, 176], sizes = [8, 16], strides = [1, 1]} : vector<16x192xbf16> to vector<8x16xbf16>
    %c3_44 = arith.constant 3 : index
    %c0_45 = arith.constant 0 : index
    %c0_46 = arith.constant 0 : index
    %76 = vector.load %arg17[%c3_44, %c0_45, %c0_46] : memref<8x8x16xbf16, #tpu.memory_space<vmem>>, vector<1x8x16xbf16>
    %77 = vector.shape_cast %76 : vector<1x8x16xbf16> to vector<8x16xbf16>
    %78 = vector.shape_cast %75 : vector<8x16xbf16> to vector<1x8x16xbf16>
    tpu.vector_store %arg17[%c3_44, %c0_45, %c0_46], %78 {strides = array<i32>} : memref<8x8x16xbf16, #tpu.memory_space<vmem>>, vector<1x8x16xbf16>,
    %79 = vector.extract_strided_slice %30 {offsets = [8, 0], sizes = [8, 16], strides = [1, 1]} : vector<16x192xbf16> to vector<8x16xbf16>
    %c4 = arith.constant 4 : index
    %c0_47 = arith.constant 0 : index
    %c0_48 = arith.constant 0 : index
    %80 = vector.load %arg15[%c4, %c0_47, %c0_48] : memref<8x8x16xbf16, #tpu.memory_space<vmem>>, vector<1x8x16xbf16>
    %81 = vector.shape_cast %80 : vector<1x8x16xbf16> to vector<8x16xbf16>
    %82 = vector.shape_cast %79 : vector<8x16xbf16> to vector<1x8x16xbf16>
    tpu.vector_store %arg15[%c4, %c0_47, %c0_48], %82 {strides = array<i32>} : memref<8x8x16xbf16, #tpu.memory_space<vmem>>, vector<1x8x16xbf16>,
    %83 = vector.extract_strided_slice %30 {offsets = [8, 64], sizes = [8, 16], strides = [1, 1]} : vector<16x192xbf16> to vector<8x16xbf16>
    %c4_49 = arith.constant 4 : index
    %c0_50 = arith.constant 0 : index
    %c0_51 = arith.constant 0 : index
    %84 = vector.load %arg16[%c4_49, %c0_50, %c0_51] : memref<8x8x16xbf16, #tpu.memory_space<vmem>>, vector<1x8x16xbf16>
    %85 = vector.shape_cast %84 : vector<1x8x16xbf16> to vector<8x16xbf16>
    %86 = vector.shape_cast %83 : vector<8x16xbf16> to vector<1x8x16xbf16>
    tpu.vector_store %arg16[%c4_49, %c0_50, %c0_51], %86 {strides = array<i32>} : memref<8x8x16xbf16, #tpu.memory_space<vmem>>, vector<1x8x16xbf16>,
    %87 = vector.extract_strided_slice %30 {offsets = [8, 128], sizes = [8, 16], strides = [1, 1]} : vector<16x192xbf16> to vector<8x16xbf16>
    %c4_52 = arith.constant 4 : index
    %c0_53 = arith.constant 0 : index
    %c0_54 = arith.constant 0 : index
    %88 = vector.load %arg17[%c4_52, %c0_53, %c0_54] : memref<8x8x16xbf16, #tpu.memory_space<vmem>>, vector<1x8x16xbf16>
    %89 = vector.shape_cast %88 : vector<1x8x16xbf16> to vector<8x16xbf16>
    %90 = vector.shape_cast %87 : vector<8x16xbf16> to vector<1x8x16xbf16>
    tpu.vector_store %arg17[%c4_52, %c0_53, %c0_54], %90 {strides = array<i32>} : memref<8x8x16xbf16, #tpu.memory_space<vmem>>, vector<1x8x16xbf16>,
    %91 = vector.extract_strided_slice %30 {offsets = [8, 16], sizes = [8, 16], strides = [1, 1]} : vector<16x192xbf16> to vector<8x16xbf16>
    %c5 = arith.constant 5 : index
    %c0_55 = arith.constant 0 : index
    %c0_56 = arith.constant 0 : index
    %92 = vector.load %arg15[%c5, %c0_55, %c0_56] : memref<8x8x16xbf16, #tpu.memory_space<vmem>>, vector<1x8x16xbf16>
    %93 = vector.shape_cast %92 : vector<1x8x16xbf16> to vector<8x16xbf16>
    %94 = vector.shape_cast %91 : vector<8x16xbf16> to vector<1x8x16xbf16>
    tpu.vector_store %arg15[%c5, %c0_55, %c0_56], %94 {strides = array<i32>} : memref<8x8x16xbf16, #tpu.memory_space<vmem>>, vector<1x8x16xbf16>,
    %95 = vector.extract_strided_slice %30 {offsets = [8, 80], sizes = [8, 16], strides = [1, 1]} : vector<16x192xbf16> to vector<8x16xbf16>
    %c5_57 = arith.constant 5 : index
    %c0_58 = arith.constant 0 : index
    %c0_59 = arith.constant 0 : index
    %96 = vector.load %arg16[%c5_57, %c0_58, %c0_59] : memref<8x8x16xbf16, #tpu.memory_space<vmem>>, vector<1x8x16xbf16>
    %97 = vector.shape_cast %96 : vector<1x8x16xbf16> to vector<8x16xbf16>
    %98 = vector.shape_cast %95 : vector<8x16xbf16> to vector<1x8x16xbf16>
    tpu.vector_store %arg16[%c5_57, %c0_58, %c0_59], %98 {strides = array<i32>} : memref<8x8x16xbf16, #tpu.memory_space<vmem>>, vector<1x8x16xbf16>,
    %99 = vector.extract_strided_slice %30 {offsets = [8, 144], sizes = [8, 16], strides = [1, 1]} : vector<16x192xbf16> to vector<8x16xbf16>
    %c5_60 = arith.constant 5 : index
    %c0_61 = arith.constant 0 : index
    %c0_62 = arith.constant 0 : index
    %100 = vector.load %arg17[%c5_60, %c0_61, %c0_62] : memref<8x8x16xbf16, #tpu.memory_space<vmem>>, vector<1x8x16xbf16>
    %101 = vector.shape_cast %100 : vector<1x8x16xbf16> to vector<8x16xbf16>
    %102 = vector.shape_cast %99 : vector<8x16xbf16> to vector<1x8x16xbf16>
    tpu.vector_store %arg17[%c5_60, %c0_61, %c0_62], %102 {strides = array<i32>} : memref<8x8x16xbf16, #tpu.memory_space<vmem>>, vector<1x8x16xbf16>,
    %103 = vector.extract_strided_slice %30 {offsets = [8, 32], sizes = [8, 16], strides = [1, 1]} : vector<16x192xbf16> to vector<8x16xbf16>
    %c6 = arith.constant 6 : index
    %c0_63 = arith.constant 0 : index
    %c0_64 = arith.constant 0 : index
    %104 = vector.load %arg15[%c6, %c0_63, %c0_64] : memref<8x8x16xbf16, #tpu.memory_space<vmem>>, vector<1x8x16xbf16>
    %105 = vector.shape_cast %104 : vector<1x8x16xbf16> to vector<8x16xbf16>
    %106 = vector.shape_cast %103 : vector<8x16xbf16> to vector<1x8x16xbf16>
    tpu.vector_store %arg15[%c6, %c0_63, %c0_64], %106 {strides = array<i32>} : memref<8x8x16xbf16, #tpu.memory_space<vmem>>, vector<1x8x16xbf16>,
    %107 = vector.extract_strided_slice %30 {offsets = [8, 96], sizes = [8, 16], strides = [1, 1]} : vector<16x192xbf16> to vector<8x16xbf16>
    %c6_65 = arith.constant 6 : index
    %c0_66 = arith.constant 0 : index
    %c0_67 = arith.constant 0 : index
    %108 = vector.load %arg16[%c6_65, %c0_66, %c0_67] : memref<8x8x16xbf16, #tpu.memory_space<vmem>>, vector<1x8x16xbf16>
    %109 = vector.shape_cast %108 : vector<1x8x16xbf16> to vector<8x16xbf16>
    %110 = vector.shape_cast %107 : vector<8x16xbf16> to vector<1x8x16xbf16>
    tpu.vector_store %arg16[%c6_65, %c0_66, %c0_67], %110 {strides = array<i32>} : memref<8x8x16xbf16, #tpu.memory_space<vmem>>, vector<1x8x16xbf16>,
    %111 = vector.extract_strided_slice %30 {offsets = [8, 160], sizes = [8, 16], strides = [1, 1]} : vector<16x192xbf16> to vector<8x16xbf16>
    %c6_68 = arith.constant 6 : index
    %c0_69 = arith.constant 0 : index
    %c0_70 = arith.constant 0 : index
    %112 = vector.load %arg17[%c6_68, %c0_69, %c0_70] : memref<8x8x16xbf16, #tpu.memory_space<vmem>>, vector<1x8x16xbf16>
    %113 = vector.shape_cast %112 : vector<1x8x16xbf16> to vector<8x16xbf16>
    %114 = vector.shape_cast %111 : vector<8x16xbf16> to vector<1x8x16xbf16>
    tpu.vector_store %arg17[%c6_68, %c0_69, %c0_70], %114 {strides = array<i32>} : memref<8x8x16xbf16, #tpu.memory_space<vmem>>, vector<1x8x16xbf16>,
    %115 = vector.extract_strided_slice %30 {offsets = [8, 48], sizes = [8, 16], strides = [1, 1]} : vector<16x192xbf16> to vector<8x16xbf16>
    %c7 = arith.constant 7 : index
    %c0_71 = arith.constant 0 : index
    %c0_72 = arith.constant 0 : index
    %116 = vector.load %arg15[%c7, %c0_71, %c0_72] : memref<8x8x16xbf16, #tpu.memory_space<vmem>>, vector<1x8x16xbf16>
    %117 = vector.shape_cast %116 : vector<1x8x16xbf16> to vector<8x16xbf16>
    %118 = vector.shape_cast %115 : vector<8x16xbf16> to vector<1x8x16xbf16>
    tpu.vector_store %arg15[%c7, %c0_71, %c0_72], %118 {strides = array<i32>} : memref<8x8x16xbf16, #tpu.memory_space<vmem>>, vector<1x8x16xbf16>,
    %119 = vector.extract_strided_slice %30 {offsets = [8, 112], sizes = [8, 16], strides = [1, 1]} : vector<16x192xbf16> to vector<8x16xbf16>
    %c7_73 = arith.constant 7 : index
    %c0_74 = arith.constant 0 : index
    %c0_75 = arith.constant 0 : index
    %120 = vector.load %arg16[%c7_73, %c0_74, %c0_75] : memref<8x8x16xbf16, #tpu.memory_space<vmem>>, vector<1x8x16xbf16>
    %121 = vector.shape_cast %120 : vector<1x8x16xbf16> to vector<8x16xbf16>
    %122 = vector.shape_cast %119 : vector<8x16xbf16> to vector<1x8x16xbf16>
    tpu.vector_store %arg16[%c7_73, %c0_74, %c0_75], %122 {strides = array<i32>} : memref<8x8x16xbf16, #tpu.memory_space<vmem>>, vector<1x8x16xbf16>,
    %123 = vector.extract_strided_slice %30 {offsets = [8, 176], sizes = [8, 16], strides = [1, 1]} : vector<16x192xbf16> to vector<8x16xbf16>
    %c7_76 = arith.constant 7 : index
    %c0_77 = arith.constant 0 : index
    %c0_78 = arith.constant 0 : index
    %124 = vector.load %arg17[%c7_76, %c0_77, %c0_78] : memref<8x8x16xbf16, #tpu.memory_space<vmem>>, vector<1x8x16xbf16>
    %125 = vector.shape_cast %124 : vector<1x8x16xbf16> to vector<8x16xbf16>
    %126 = vector.shape_cast %123 : vector<8x16xbf16> to vector<1x8x16xbf16>
    tpu.vector_store %arg17[%c7_76, %c0_77, %c0_78], %126 {strides = array<i32>} : memref<8x8x16xbf16, #tpu.memory_space<vmem>>, vector<1x8x16xbf16>,
    %c0_79 = arith.constant 0 : index
    %c0_80 = arith.constant 0 : index
    %c0_81 = arith.constant 0 : index
    %127 = vector.load %arg15[%c0_79, %c0_80, %c0_81] : memref<8x8x16xbf16, #tpu.memory_space<vmem>>, vector<8x8x16xbf16>
    %c0_82 = arith.constant 0 : index
    %c0_83 = arith.constant 0 : index
    %c0_84 = arith.constant 0 : index
    %128 = vector.load %arg16[%c0_82, %c0_83, %c0_84] : memref<8x8x16xbf16, #tpu.memory_space<vmem>>, vector<8x8x16xbf16>
    %c0_85 = arith.constant 0 : index
    %c0_86 = arith.constant 0 : index
    %c0_87 = arith.constant 0 : index
    %129 = vector.load %arg17[%c0_85, %c0_86, %c0_87] : memref<8x8x16xbf16, #tpu.memory_space<vmem>>, vector<8x8x16xbf16>
    "tpu.trace_start"() <{level = 10 : i32, message = "bqd,bkd->bqk"}> : () -> ()
    %cst_88 = arith.constant dense<0.000000e+00> : vector<8x8x8xf32>
    %130 = tpu.matmul %127, %128, %cst_88 {dimension_numbers = #tpu.dot_dimension_numbers<[2], [2], [1], [1], [0, 0, 0, 1, 1, 1], [0], [0]>} : vector<8x8x16xbf16>, vector<8x8x16xbf16>, vector<8x8x8xf32> -> vector<8x8x8xf32>
    "tpu.trace_stop"() : () -> ()
    %cst_89 = arith.constant 2.500000e-01 : f32
    %131 = vector.broadcast %cst_89 : f32 to vector<8x8x8xf32>
    %132 = arith.mulf %130, %131 : vector<8x8x8xf32>
    %133 = tpu.iota {dimensions = array<i32: 0>} : vector<8x8xi32>
    %134 = tpu.iota {dimensions = array<i32: 1>} : vector<8x8xi32>
    %135 = arith.cmpi sle, %134, %133 : vector<8x8xi32>
    %136 = vector.shape_cast %135 : vector<8x8xi1> to vector<1x8x8xi1>
    %cst_90 = arith.constant -1.000000e+30 : f32
    %137 = vector.shape_cast %136 : vector<1x8x8xi1> to vector<1x8x8xi1>
    %138 = vector.broadcast %137 : vector<1x8x8xi1> to vector<8x8x8xi1>
    %139 = vector.broadcast %cst_90 : f32 to vector<8x8x8xf32>
    %140 = arith.select %138, %132, %139 : vector<8x8x8xi1>, vector<8x8x8xf32>
    %cst_91 = arith.constant dense<0xFF800000> : vector<8x8xf32>
    %141 = vector.multi_reduction <maximumf>, %140, %cst_91 [2] : vector<8x8x8xf32> to vector<8x8xf32>
    %142 = vector.shape_cast %141 : vector<8x8xf32> to vector<8x8x1xf32>
    %143 = vector.broadcast %142 : vector<8x8x1xf32> to vector<8x8x8xf32>
    %144 = arith.subf %140, %143 : vector<8x8x8xf32>
    %145 = math.exp %144 : vector<8x8x8xf32>
    %cst_92 = arith.constant dense<0.000000e+00> : vector<8x8xf32>
    %146 = vector.multi_reduction <add>, %145, %cst_92 [2] : vector<8x8x8xf32> to vector<8x8xf32>
    %147 = vector.shape_cast %146 : vector<8x8xf32> to vector<8x8x1xf32>
    %148 = tpu.reciprocal %147 {approx = true} : vector<8x8x1xf32> -> vector<8x8x1xf32>
    %149 = vector.broadcast %148 : vector<8x8x1xf32> to vector<8x8x8xf32>
    %150 = arith.mulf %145, %149 : vector<8x8x8xf32>
    %151 = arith.truncf %150 : vector<8x8x8xf32> to vector<8x8x8xbf16>
    "tpu.trace_start"() <{level = 10 : i32, message = "bqk,bkd->bqd"}> : () -> ()
    %cst_93 = arith.constant dense<0.000000e+00> : vector<8x8x16xf32>
    %152 = tpu.matmul %151, %129, %cst_93 {dimension_numbers = #tpu.dot_dimension_numbers<[2], [1], [1], [2], [0, 0, 0, 1, 1, 2], [0], [0]>} : vector<8x8x8xbf16>, vector<8x8x16xbf16>, vector<8x8x16xf32> -> vector<8x8x16xf32>
    "tpu.trace_stop"() : () -> ()
    %153 = arith.truncf %152 : vector<8x8x16xf32> to vector<8x8x16xbf16>
    %154 = vector.extract_strided_slice %153 {offsets = [0, 0, 0], sizes = [1, 8, 16], strides = [1, 1, 1]} : vector<8x8x16xbf16> to vector<1x8x16xbf16>
    %155 = vector.shape_cast %154 : vector<1x8x16xbf16> to vector<8x16xbf16>
    %c0_94 = arith.constant 0 : index
    %c0_95 = arith.constant 0 : index
    %156 = vector.load %arg18[%c0_94, %c0_95] : memref<16x64xbf16, #tpu.memory_space<vmem>>, vector<8x16xbf16>
    tpu.vector_store %arg18[%c0_94, %c0_95], %155 {strides = array<i32>} : memref<16x64xbf16, #tpu.memory_space<vmem>>, vector<8x16xbf16>,
    %157 = vector.extract_strided_slice %153 {offsets = [1, 0, 0], sizes = [1, 8, 16], strides = [1, 1, 1]} : vector<8x8x16xbf16> to vector<1x8x16xbf16>
    %158 = vector.shape_cast %157 : vector<1x8x16xbf16> to vector<8x16xbf16>
    %c0_96 = arith.constant 0 : index
    %c16 = arith.constant 16 : index
    %159 = vector.load %arg18[%c0_96, %c16] : memref<16x64xbf16, #tpu.memory_space<vmem>>, vector<8x16xbf16>
    tpu.vector_store %arg18[%c0_96, %c16], %158 {strides = array<i32>} : memref<16x64xbf16, #tpu.memory_space<vmem>>, vector<8x16xbf16>,
    %160 = vector.extract_strided_slice %153 {offsets = [2, 0, 0], sizes = [1, 8, 16], strides = [1, 1, 1]} : vector<8x8x16xbf16> to vector<1x8x16xbf16>
    %161 = vector.shape_cast %160 : vector<1x8x16xbf16> to vector<8x16xbf16>
    %c0_97 = arith.constant 0 : index
    %c32 = arith.constant 32 : index
    %162 = vector.load %arg18[%c0_97, %c32] : memref<16x64xbf16, #tpu.memory_space<vmem>>, vector<8x16xbf16>
    tpu.vector_store %arg18[%c0_97, %c32], %161 {strides = array<i32>} : memref<16x64xbf16, #tpu.memory_space<vmem>>, vector<8x16xbf16>,
    %163 = vector.extract_strided_slice %153 {offsets = [3, 0, 0], sizes = [1, 8, 16], strides = [1, 1, 1]} : vector<8x8x16xbf16> to vector<1x8x16xbf16>
    %164 = vector.shape_cast %163 : vector<1x8x16xbf16> to vector<8x16xbf16>
    %c0_98 = arith.constant 0 : index
    %c48 = arith.constant 48 : index
    %165 = vector.load %arg18[%c0_98, %c48] : memref<16x64xbf16, #tpu.memory_space<vmem>>, vector<8x16xbf16>
    tpu.vector_store %arg18[%c0_98, %c48], %164 {strides = array<i32>} : memref<16x64xbf16, #tpu.memory_space<vmem>>, vector<8x16xbf16>,
    %166 = vector.extract_strided_slice %153 {offsets = [4, 0, 0], sizes = [1, 8, 16], strides = [1, 1, 1]} : vector<8x8x16xbf16> to vector<1x8x16xbf16>
    %167 = vector.shape_cast %166 : vector<1x8x16xbf16> to vector<8x16xbf16>
    %c8 = arith.constant 8 : index
    %c0_99 = arith.constant 0 : index
    %168 = vector.load %arg18[%c8, %c0_99] : memref<16x64xbf16, #tpu.memory_space<vmem>>, vector<8x16xbf16>
    tpu.vector_store %arg18[%c8, %c0_99], %167 {strides = array<i32>} : memref<16x64xbf16, #tpu.memory_space<vmem>>, vector<8x16xbf16>,
    %169 = vector.extract_strided_slice %153 {offsets = [5, 0, 0], sizes = [1, 8, 16], strides = [1, 1, 1]} : vector<8x8x16xbf16> to vector<1x8x16xbf16>
    %170 = vector.shape_cast %169 : vector<1x8x16xbf16> to vector<8x16xbf16>
    %c8_100 = arith.constant 8 : index
    %c16_101 = arith.constant 16 : index
    %171 = vector.load %arg18[%c8_100, %c16_101] : memref<16x64xbf16, #tpu.memory_space<vmem>>, vector<8x16xbf16>
    tpu.vector_store %arg18[%c8_100, %c16_101], %170 {strides = array<i32>} : memref<16x64xbf16, #tpu.memory_space<vmem>>, vector<8x16xbf16>,
    %172 = vector.extract_strided_slice %153 {offsets = [6, 0, 0], sizes = [1, 8, 16], strides = [1, 1, 1]} : vector<8x8x16xbf16> to vector<1x8x16xbf16>
    %173 = vector.shape_cast %172 : vector<1x8x16xbf16> to vector<8x16xbf16>
    %c8_102 = arith.constant 8 : index
    %c32_103 = arith.constant 32 : index
    %174 = vector.load %arg18[%c8_102, %c32_103] : memref<16x64xbf16, #tpu.memory_space<vmem>>, vector<8x16xbf16>
    tpu.vector_store %arg18[%c8_102, %c32_103], %173 {strides = array<i32>} : memref<16x64xbf16, #tpu.memory_space<vmem>>, vector<8x16xbf16>,
    %175 = vector.extract_strided_slice %153 {offsets = [7, 0, 0], sizes = [1, 8, 16], strides = [1, 1, 1]} : vector<8x8x16xbf16> to vector<1x8x16xbf16>
    %176 = vector.shape_cast %175 : vector<1x8x16xbf16> to vector<8x16xbf16>
    %c8_104 = arith.constant 8 : index
    %c48_105 = arith.constant 48 : index
    %177 = vector.load %arg18[%c8_104, %c48_105] : memref<16x64xbf16, #tpu.memory_space<vmem>>, vector<8x16xbf16>
    tpu.vector_store %arg18[%c8_104, %c48_105], %176 {strides = array<i32>} : memref<16x64xbf16, #tpu.memory_space<vmem>>, vector<8x16xbf16>,
    %c0_106 = arith.constant 0 : index
    %c0_107 = arith.constant 0 : index
    %178 = vector.load %arg18[%c0_106, %c0_107] : memref<16x64xbf16, #tpu.memory_space<vmem>>, vector<16x64xbf16>
    %c0_108 = arith.constant 0 : index
    %c0_109 = arith.constant 0 : index
    %179 = vector.load %arg6[%c0_108, %c0_109] : memref<64x64xbf16, #tpu.memory_space<vmem>>, vector<64x64xbf16>
    %cst_110 = arith.constant dense<0.000000e+00> : vector<16x64xf32>
    %180 = tpu.matmul %178, %179, %cst_110 {dimension_numbers = #tpu.dot_dimension_numbers<[1], [0], [0], [1], [0, 0, 1, 1], [], []>} : vector<16x64xbf16>, vector<64x64xbf16>, vector<16x64xf32> -> vector<16x64xf32>
    %c0_111 = arith.constant 0 : index
    %c0_112 = arith.constant 0 : index
    %181 = vector.load %arg7[%c0_111, %c0_112] : memref<1x64xf32, #tpu.memory_space<vmem>>, vector<1x64xf32>
    %182 = vector.broadcast %181 : vector<1x64xf32> to vector<16x64xf32>
    %183 = arith.addf %180, %182 : vector<16x64xf32>
    %184 = arith.addf %1, %183 : vector<16x64xf32>
    %c0_113 = arith.constant 0 : index
    %c0_114 = arith.constant 0 : index
    %185 = vector.load %arg8[%c0_113, %c0_114] : memref<1x64xf32, #tpu.memory_space<vmem>>, vector<1x64xf32>
    %c0_115 = arith.constant 0 : index
    %c0_116 = arith.constant 0 : index
    %186 = vector.load %arg9[%c0_115, %c0_116] : memref<1x64xf32, #tpu.memory_space<vmem>>, vector<1x64xf32>
    %cst_117 = arith.constant dense<0.000000e+00> : vector<16xf32>
    %187 = vector.multi_reduction <add>, %184, %cst_117 [1] : vector<16x64xf32> to vector<16xf32>
    %188 = vector.shape_cast %187 : vector<16xf32> to vector<16x1xf32>
    %cst_118 = arith.constant 6.400000e+01 : f32
    %189 = vector.broadcast %cst_118 : f32 to vector<16x1xf32>
    %190 = arith.divf %188, %189 : vector<16x1xf32>
    %191 = vector.broadcast %190 : vector<16x1xf32> to vector<16x64xf32>
    %192 = arith.subf %184, %191 : vector<16x64xf32>
    %193 = arith.mulf %192, %192 : vector<16x64xf32>
    %cst_119 = arith.constant dense<0.000000e+00> : vector<16xf32>
    %194 = vector.multi_reduction <add>, %193, %cst_119 [1] : vector<16x64xf32> to vector<16xf32>
    %195 = vector.shape_cast %194 : vector<16xf32> to vector<16x1xf32>
    %cst_120 = arith.constant 6.400000e+01 : f32
    %196 = vector.broadcast %cst_120 : f32 to vector<16x1xf32>
    %197 = arith.divf %195, %196 : vector<16x1xf32>
    %cst_121 = arith.constant 9.99999974E-6 : f32
    %198 = vector.broadcast %cst_121 : f32 to vector<16x1xf32>
    %199 = arith.addf %197, %198 : vector<16x1xf32>
    %200 = math.rsqrt %199 : vector<16x1xf32>
    %201 = vector.broadcast %200 : vector<16x1xf32> to vector<16x64xf32>
    %202 = arith.mulf %192, %201 : vector<16x64xf32>
    %203 = vector.broadcast %185 : vector<1x64xf32> to vector<16x64xf32>
    %204 = arith.mulf %202, %203 : vector<16x64xf32>
    %205 = vector.broadcast %186 : vector<1x64xf32> to vector<16x64xf32>
    %206 = arith.addf %204, %205 : vector<16x64xf32>
    %207 = arith.truncf %206 : vector<16x64xf32> to vector<16x64xbf16>
    %c0_122 = arith.constant 0 : index
    %c0_123 = arith.constant 0 : index
    %208 = vector.load %arg10[%c0_122, %c0_123] : memref<64x256xbf16, #tpu.memory_space<vmem>>, vector<64x256xbf16>
    %cst_124 = arith.constant dense<0.000000e+00> : vector<16x256xf32>
    %209 = tpu.matmul %207, %208, %cst_124 {dimension_numbers = #tpu.dot_dimension_numbers<[1], [0], [0], [1], [0, 0, 1, 1], [], []>} : vector<16x64xbf16>, vector<64x256xbf16>, vector<16x256xf32> -> vector<16x256xf32>
    %c0_125 = arith.constant 0 : index
    %c0_126 = arith.constant 0 : index
    %210 = vector.load %arg11[%c0_125, %c0_126] : memref<1x256xf32, #tpu.memory_space<vmem>>, vector<1x256xf32>
    %211 = vector.broadcast %210 : vector<1x256xf32> to vector<16x256xf32>
    %212 = arith.addf %209, %211 : vector<16x256xf32>
    %cst_127 = arith.constant 5.000000e-01 : f32
    %213 = vector.broadcast %cst_127 : f32 to vector<16x256xf32>
    %214 = arith.mulf %213, %212 : vector<16x256xf32>
    %cst_128 = arith.constant 4.471500e-02 : f32
    %215 = vector.broadcast %cst_128 : f32 to vector<16x256xf32>
    %216 = arith.mulf %215, %212 : vector<16x256xf32>
    %217 = arith.mulf %216, %212 : vector<16x256xf32>
    %218 = arith.mulf %217, %212 : vector<16x256xf32>
    %219 = arith.addf %212, %218 : vector<16x256xf32>
    %cst_129 = arith.constant 0.797884583 : f32
    %220 = vector.broadcast %cst_129 : f32 to vector<16x256xf32>
    %221 = arith.mulf %220, %219 : vector<16x256xf32>
    %222 = math.tanh %221 : vector<16x256xf32>
    %cst_130 = arith.constant 1.000000e+00 : f32
    %223 = vector.broadcast %cst_130 : f32 to vector<16x256xf32>
    %224 = arith.addf %223, %222 : vector<16x256xf32>
    %225 = arith.mulf %214, %224 : vector<16x256xf32>
    %226 = arith.truncf %225 : vector<16x256xf32> to vector<16x256xbf16>
    %c0_131 = arith.constant 0 : index
    %c0_132 = arith.constant 0 : index
    %227 = vector.load %arg12[%c0_131, %c0_132] : memref<256x64xbf16, #tpu.memory_space<vmem>>, vector<256x64xbf16>
    %cst_133 = arith.constant dense<0.000000e+00> : vector<16x64xf32>
    %228 = tpu.matmul %226, %227, %cst_133 {dimension_numbers = #tpu.dot_dimension_numbers<[1], [0], [0], [1], [0, 0, 1, 1], [], []>} : vector<16x256xbf16>, vector<256x64xbf16>, vector<16x64xf32> -> vector<16x64xf32>
    %c0_134 = arith.constant 0 : index
    %c0_135 = arith.constant 0 : index
    %229 = vector.load %arg13[%c0_134, %c0_135] : memref<1x64xf32, #tpu.memory_space<vmem>>, vector<1x64xf32>
    %230 = vector.broadcast %229 : vector<1x64xf32> to vector<16x64xf32>
    %231 = arith.addf %228, %230 : vector<16x64xf32>
    %232 = arith.addf %184, %231 : vector<16x64xf32>
    %233 = arith.truncf %232 : vector<16x64xf32> to vector<16x64xbf16>
    %c0_136 = arith.constant 0 : index
    %c0_137 = arith.constant 0 : index
    %234 = vector.load %arg14[%c0_136, %c0_137] : memref<16x64xbf16, #tpu.memory_space<vmem>>, vector<16x64xbf16>
    tpu.vector_store %arg14[%c0_136, %c0_137], %233 {strides = array<i32>} : memref<16x64xbf16, #tpu.memory_space<vmem>>, vector<16x64xbf16>,
    return
  }
  func.func @transform_0(%arg0: i32) -> (i32, i32) {
    %c0_i32 = arith.constant 0 : i32
    %c0_i32_0 = arith.constant 0 : i32
    return %arg0, %c0_i32 : i32, i32
  }
  func.func @transform_1(%arg0: i32) -> (i32, i32) {
    %c0_i32 = arith.constant 0 : i32
    %c0_i32_0 = arith.constant 0 : i32
    %c0_i32_1 = arith.constant 0 : i32
    return %c0_i32, %c0_i32_0 : i32, i32
  }
  func.func @transform_2(%arg0: i32) -> (i32, i32) {
    %c0_i32 = arith.constant 0 : i32
    %c0_i32_0 = arith.constant 0 : i32
    %c0_i32_1 = arith.constant 0 : i32
    return %c0_i32, %c0_i32_0 : i32, i32
  }
  func.func @transform_3(%arg0: i32) -> (i32, i32) {
    %c0_i32 = arith.constant 0 : i32
    %c0_i32_0 = arith.constant 0 : i32
    %c0_i32_1 = arith.constant 0 : i32
    return %c0_i32, %c0_i32_0 : i32, i32
  }
  func.func @transform_4(%arg0: i32) -> (i32, i32) {
    %c0_i32 = arith.constant 0 : i32
    %c0_i32_0 = arith.constant 0 : i32
    %c0_i32_1 = arith.constant 0 : i32
    return %c0_i32, %c0_i32_0 : i32, i32
  }
  func.func @transform_5(%arg0: i32) -> (i32, i32) {
    %c0_i32 = arith.constant 0 : i32
    %c0_i32_0 = arith.constant 0 : i32
    %c0_i32_1 = arith.constant 0 : i32
    return %c0_i32, %c0_i32_0 : i32, i32
  }
  func.func @transform_6(%arg0: i32) -> (i32, i32) {
    %c0_i32 = arith.constant 0 : i32
    %c0_i32_0 = arith.constant 0 : i32
    %c0_i32_1 = arith.constant 0 : i32
    return %c0_i32, %c0_i32_0 : i32, i32
  }
  func.func @transform_7(%arg0: i32) -> (i32, i32) {
    %c0_i32 = arith.constant 0 : i32
    %c0_i32_0 = arith.constant 0 : i32
    %c0_i32_1 = arith.constant 0 : i32
    return %c0_i32, %c0_i32_0 : i32, i32
  }
  func.func @transform_8(%arg0: i32) -> (i32, i32) {
    %c0_i32 = arith.constant 0 : i32
    %c0_i32_0 = arith.constant 0 : i32
    %c0_i32_1 = arith.constant 0 : i32
    return %c0_i32, %c0_i32_0 : i32, i32
  }
  func.func @transform_9(%arg0: i32) -> (i32, i32) {
    %c0_i32 = arith.constant 0 : i32
    %c0_i32_0 = arith.constant 0 : i32
    %c0_i32_1 = arith.constant 0 : i32
    return %c0_i32, %c0_i32_0 : i32, i32
  }
  func.func @transform_10(%arg0: i32) -> (i32, i32) {
    %c0_i32 = arith.constant 0 : i32
    %c0_i32_0 = arith.constant 0 : i32
    %c0_i32_1 = arith.constant 0 : i32
    return %c0_i32, %c0_i32_0 : i32, i32
  }
  func.func @transform_11(%arg0: i32) -> (i32, i32) {
    %c0_i32 = arith.constant 0 : i32
    %c0_i32_0 = arith.constant 0 : i32
    %c0_i32_1 = arith.constant 0 : i32
    return %c0_i32, %c0_i32_0 : i32, i32
  }
  func.func @transform_12(%arg0: i32) -> (i32, i32) {
    %c0_i32 = arith.constant 0 : i32
    %c0_i32_0 = arith.constant 0 : i32
    %c0_i32_1 = arith.constant 0 : i32
    return %c0_i32, %c0_i32_0 : i32, i32
  }
  func.func @transform_13(%arg0: i32) -> (i32, i32) {
    %c0_i32 = arith.constant 0 : i32
    %c0_i32_0 = arith.constant 0 : i32
    return %arg0, %c0_i32 : i32, i32
  }
}

</mosaic_0001>

<bundles_post_ra>
// kernel: gpt_forward.5
= control target key start
LH: loop header
LB: loop body
LE: loop exit
PB: predicated region body
PF: predicated region fallthrough
CT: control target
= control target key end

     0   :  { %vm29_vm0 = vcmask 523264   ;;  %s305_s0 = inlined_call_operand.vmem [shape: bf16[16,64], index: 0, kind: input, shape index: {}]   ;;  %s306_s1 = inlined_call_operand.vmem [shape: f32[1,64], index: 1, kind: input, shape index: {}]   ;;  %s307_s2 = inlined_call_operand.vmem [shape: f32[1,64], index: 2, kind: input, shape index: {}]   ;;  %s308_s3 = inlined_call_operand.vmem [shape: bf16[64,128], index: 3, kind: input, shape index: {}]   ;;  %s309_s4 = inlined_call_operand.hbm [shape: f32[16,128], index: 4, kind: output, shape index: {}]  }
   0x1   :  { %v179_v0 = vld [vmem:[%s305_s0] sm:$0xff]  }
   0x2   :  { %v180_v1 = vunpack.c.l.bf16 %v179_v0  ;;  %v181_v2 = vunpack.c.h.bf16 %v179_v0 }
   0x4   :  { %v30_v3 = vsel %vm29_vm0, %v180_v1, 0.0 }
   0x5   :  { %9 = vsyncpa [#allocation4], 0  ;;  %31 = vadd.xlane.f32.xlu0 %v30_v3  ;;  %v33_v4 = vsel %vm29_vm0, %v181_v2, 0.0  ;;  %v204_v15 = vld [vmem:[%s308_s3] sm:$0xff]   ;;  %v236_v16 = vmov 0.0   ;;  %v205_v17 = vld [vmem:[%s308_s3 + $0x8] sm:$0xff]  }
   0x6   :  { %187 = vmatprep.subr.bf16.mxu0 %v236_v16  ;;  %v206_v18 = vld [vmem:[%s308_s3 + $0x10] sm:$0xff]   ;;  %v207_v19 = vld [vmem:[%s308_s3 + $0x18] sm:$0xff]   ;;  %vm237_vm1 = vmmov 0   ;;  %v171_v28 = vld [vmem:[%s306_s1] ss:$0 sm:$0xff]  ;;  %s238_s27 = smov [#allocation3]  }
   0x7   :  { %188 = vmatpush3.bf16.msra.mxu0 %v204_v15  ;;  %195 = vmatprep.mubr.msk.bf16.mxu0 %vm237_vm1, %v236_v16  ;;  %v172_v32 = vld [vmem:[%s307_s2] ss:$0 sm:$0xff]  ;;  %s160_s28 = sshll.u32 %s238_s27, 4  ;;  %s161_s28 = int_to_ptr.vmem [resolvable:$true] %s160_s28 }
   0x8   :  { %189 = vmatprep.subr.bf16.mxu0 %v236_v16  ;;  %s212_s1 = scalar_lea.vmem %s161_s28, 256  ;;  %p217_p1 = scmp.lt.s32.totalorder %s161_s28, %s161_s28 }
   0x9   :  { %34 = vadd.xlane.f32.xlu0 %v33_v4  ;;  %p213_p0 = scmp.ne.s32.totalorder %s161_s28, %s212_s1  ;;  %p218_p2 = scmp.lt.s32.totalorder %s212_s1, %s212_s1 }
   0xb   :  { %190 = vmatpush3.bf16.msra.mxu0 %v205_v17  ;;  %p219_p3 = por %p218_p2, %p217_p1 }
   0xc   :  { %191 = vmatprep.subr.bf16.mxu0 %v236_v16 }
   0xd   :  { %p220_p4 = pnand %p219_p3, %p213_p0 }
   0xf   :  { %192 = vmatpush3.bf16.msra.mxu0 %v206_v18 }
  0x10   :  { %193 = vmatprep.subr.bf16.mxu0 %v236_v16 }
  0x13   :  { %194 = vmatpush3.bf16.msra.mxu0 %v207_v19 }
  0x92   :  { %v32_v5 = vpop.xlane.xlu0 %31 }
  0x93   :  { %v37_v6 = vmul.f32 0.015625, %v32_v5 }
  0x95   :  { %v39_v7 = vsub.f32 %v180_v1, %v37_v6 }
  0x96   :  { %v35_v8 = vpop.xlane.xlu0 %34 }
  0x97   :  { %v38_v9 = vmul.f32 0.015625, %v35_v8  ;;  %v41_v10 = vmul.f32 %v39_v7, %v39_v7 }
  0x99   :  { %v40_v11 = vsub.f32 %v181_v2, %v38_v9  ;;  %v43_v12 = vsel %vm29_vm0, %v41_v10, 0.0 }
  0x9a   :  { %44 = vadd.xlane.f32.xlu1 %v43_v12 }
  0x9b   :  { %v42_v13 = vmul.f32 %v40_v11, %v40_v11 }
  0x9d   :  { %v46_v14 = vsel %vm29_vm0, %v42_v13, 0.0 }
  0x9e   :  { %47 = vadd.xlane.f32.xlu1 %v46_v14 }
 0x127   :  { %v45_v20 = vpop.xlane.xlu1 %44 }
 0x128   :  { %v49_v21 = vmul.f32 0.015625, %v45_v20 }
 0x12a   :  { %v51_v22 = vadd.f32 1e-05, %v49_v21 }
 0x12b   :  { %v48_v23 = vpop.xlane.xlu1 %47 }
 0x12c   :  { %208 = vrsqrt.f32 %v51_v22  ;;  %v50_v24 = vmul.f32 0.015625, %v48_v23 }
 0x12e   :  { %v52_v25 = vadd.f32 1e-05, %v50_v24 }
 0x130   :  { %210 = vrsqrt.f32 %v52_v25 }
 0x136   :  { %v209_v26 = vpop.eup %208 }
 0x137   :  { %v55_v27 = vmul.f32 %v209_v26, %v39_v7 }
 0x139   :  { %v63_v30 = vmul.f32 %v171_v28, %v55_v27 }
 0x13a   :  { %v211_v29 = vpop.eup %210 }
 0x13b   :  { %v56_v31 = vmul.f32 %v211_v29, %v40_v11  ;;  %v71_v34 = vadd.f32 %v172_v32, %v63_v30 }
 0x13d   :  { %v64_v33 = vmul.f32 %v171_v28, %v56_v31 }
 0x13f   :  { %v72_v35 = vadd.f32 %v172_v32, %v64_v33 }
 0x141   :  { %v73_v36 = vpack.c.bf16 %v72_v35, %v71_v34 }
 0x143   :  { %74 = vst.msk [vmem:[#allocation2] sm:$0xff] %vm29_vm0, %v73_v36 }
 0x14a   :  { %v75_v37 = vld [vmem:[#allocation2] sm:$0xff] }
 0x14b   :  { %196 = vmatmul.mubr.msk.bf16.vlgmr.msra.gmra.mrb[0].mxu0 %vm29_vm0, %v75_v37 }
 0x21e   :  { %v146_v38 = vpop.f32.mrb[0].mxu0 }
 0x21f   :  { %153 = vst [vmem:[#allocation3] sm:$0xff] %v146_v38  ;;  %v197_v39 = vpop.f32.mrb[1].mxu0 }
 0x220   :  { %v149_v40 = vpop.f32.mrb[2].mxu0 }
 0x221   :  { %154 = vst [vmem:[#allocation3 + $0x8] sm:$0xff] %v149_v40  ;;  %v198_v41 = vpop.f32.mrb[3].mxu0 }
 0x222   :  { %223 = shalt.err (!%p220_p4)
}
 0x223   :  { %s224_s30 = scalar_lea.hbm %s309_s4, 256 }
 0x224   :  { %p225_p5 = scmp.ne.s32.totalorder %s309_s4, %s224_s30  ;;  %p228_p6 = scmp.lt.u32.totalorder %s224_s30, %s309_s4 }
 0x226   :  { %p230_p7 = pnand %p228_p6, %p225_p5 }
 0x228   :  { %233 = shalt.err (!%p230_p7)
}
 0x229   :  { %s239_s9 = smov 128   ;;  %s240_s10 = smov 8  }
 0x22a   :  { %166 = dma.vmem_to_hbm [thread:$0]  %s161_s28, 256, %s309_s4, [#allocation4], %s239_s9, %s239_s9, %s240_s10  }
 0x22b   :  { %234 = dma.done.wait [#allocation4], 256  }
 0x22c   :  { %235 = vsyncadd [#allocation4], 4294967040 }
 0x22d   :  { %170 = vsyncpa [#allocation4], 1 }

// kernel: gpt_forward.3
= control target key start
LH: loop header
LB: loop body
LE: loop exit
PB: predicated region body
PF: predicated region fallthrough
CT: control target
= control target key end

     0   :  { %vm51_vm0 = vcmask 523264   ;;  %v2071_v23 = vmov 0   ;;  %v106_v41 = vlaneseq  ;;  %v2072_v49 = vmov 0.0   ;;  %s2076_s28 = smov 32   ;;  %s2077_s29 = smov 16   ;;  %s2550_s0 = inlined_call_operand.vmem [shape: bf16[16,64], index: 0, kind: input, shape index: {}]   ;;  %s2551_s3 = inlined_call_operand.vmem [shape: bf16[64,192], index: 3, kind: input, shape index: {}]   ;;  %s2552_s1 = inlined_call_operand.vmem [shape: f32[1,64], index: 1, kind: input, shape index: {}]   ;;  %s2553_s2 = inlined_call_operand.vmem [shape: f32[1,64], index: 2, kind: input, shape index: {}]   ;;  %s2554_s4 = inlined_call_operand.vmem [shape: f32[1,192], index: 4, kind: input, shape index: {}]   ;;  %s2555_s5 = inlined_call_operand.vmem [shape: bf16[64,64], index: 5, kind: input, shape index: {}]   ;;  %s2556_s6 = inlined_call_operand.vmem [shape: f32[1,64], index: 6, kind: input, shape index: {}]   ;;  %s2557_s9 = inlined_call_operand.vmem [shape: bf16[64,256], index: 9, kind: input, shape index: {}]   ;;  %s2558_s7 = inlined_call_operand.vmem [shape: f32[1,64], index: 7, kind: input, shape index: {}]   ;;  %s2559_s8 = inlined_call_operand.vmem [shape: f32[1,64], index: 8, kind: input, shape index: {}]   ;;  %s2560_s11 = inlined_call_operand.vmem [shape: bf16[256,64], index: 11, kind: input, shape index: {}]   ;;  %s2561_s10 = inlined_call_operand.vmem [shape: f32[1,256], index: 10, kind: input, shape index: {}]   ;;  %s2562_s12 = inlined_call_operand.vmem [shape: f32[1,64], index: 12, kind: input, shape index: {}]   ;;  %s2563_s13 = inlined_call_operand.vmem [shape: bf16[16,64], index: 13, kind: output, shape index: {}]  }
   0x1   :  { %v1799_v0 = vld [vmem:[%s2550_s0] sm:$0xff]   ;;  %v1982_v17 = vld [vmem:[%s2551_s3 + $0x14] ss:$8 sps:$4 sm:$0xff]   ;;  %v1984_v18 = vld [vmem:[%s2551_s3 + $0x10] ss:$8 sps:$4 sm:$0xff]   ;;  %191 = vmatprep.mubr.bf16.mxu1 %v2071_v23  ;;  %1873 = vmatprep.subr.bf16.mxu0 %v2072_v49  ;;  %vm204_vm1 = vcmask 125952  }
   0x2   :  { %v2154_v1 = vunpack.c.l.bf16 %v1799_v0  ;;  %v2156_v2 = vunpack.c.h.bf16 %v1799_v0  ;;  %v1979_v15 = vld [vmem:[%s2551_s3 + $0x4] ss:$8 sps:$4 sm:$0xff]   ;;  %v1981_v16 = vld [vmem:[%s2551_s3] ss:$8 sps:$4 sm:$0xff]   ;;  %v1988_v21 = vld [vmem:[%s2551_s3 + $0x34] ss:$8 sps:$4 sm:$0xff]  }
   0x3   :  { %159 = vmatprep.subr.bf16.mxu1 %v1979_v15  ;;  %v1985_v19 = vld [vmem:[%s2551_s3 + $0x24] ss:$8 sps:$4 sm:$0xff]   ;;  %v1987_v20 = vld [vmem:[%s2551_s3 + $0x20] ss:$8 sps:$4 sm:$0xff]   ;;  %v1990_v22 = vld [vmem:[%s2551_s3 + $0x30] ss:$8 sps:$4 sm:$0xff]  }
   0x4   :  { %v52_v3 = vsel %vm51_vm0, %v2154_v1, 0.0  ;;  %v55_v4 = vsel %vm51_vm0, %v2156_v2, 0.0  ;;  %160 = vmatpush1.bf16.msra.mxu1 %v1981_v16  ;;  %v1725_v32 = vld [vmem:[%s2552_s1] ss:$0 sm:$0xff]  ;;  %v2199_v42 = vshrl.u32 %v106_v41, 7  ;;  %vm2075_vm2 = vmmov 0  }
   0x5   :  { %53 = vadd.xlane.f32.xlu0 %v52_v3  ;;  %161 = vmatprep.subr.bf16.mxu1 %v1982_v17  ;;  %v1726_v36 = vld [vmem:[%s2553_s2] ss:$0 sm:$0xff]  ;;  %s2073_s2 = smov 48   ;;  %s2078_s30 = smov 112   ;;  %vm346_vm3 = vcmask 130048   ;;  %vm838_vm4 = vcmask 1043456  }
   0x6   :  { %v108_v43 = vsub.s32 0, %v2199_v42  ;;  %v104_v44 = vld [vmem:[%s2554_s4] sm:$0x3]  ;;  %v112_v45 = vsub.s32 1, %v2199_v42  ;;  %s2074_s4 = smov 64   ;;  %1875 = vmatprep.mubr.msk.bf16.mxu0 %vm2075_vm2, %v2072_v49  ;;  %s2079_s14 = smov 96  }
   0x7   :  { %s2080_s15 = smov 80   ;;  %vm738_vm6 = vcmask 64512   ;;  %vm1234_vm7 = vcmask 130052   ;;  %vm1217_vm8 = vcmask 257152   ;;  %vm1223_vm9 = vcmask 388352  }
   0x8   :  { %162 = vmatpush1.bf16.msra.mxu1 %v1984_v18  ;;  %v109_v46 = vrot.slane %v104_v44, %v108_v43  ;;  %v113_v48 = vrot.slane %v104_v44, %v112_v45  ;;  %v726_v44 = vand.u32 127, %v106_v41  ;;  %vm1241_vm10 = vcmask 261252  }
   0x9   :  { %56 = vadd.xlane.f32.xlu0 %v55_v4  ;;  %163 = vmatprep.subr.bf16.mxu1 %v1985_v19  ;;  %vm1248_vm11 = vcmask 392452   ;;  %vm1229_vm12 = vcmask 519552   ;;  %vm1255_vm13 = vcmask 523652   ;;  %vm1718_vm14 = vcmask 519168  }
   0xa   :  { %vm2296_vm5 = vcmp.le.s32.totalorder %v726_v44, %v2199_v42 }
   0xc   :  { %164 = vmatpush1.bf16.msra.mxu1 %v1987_v20 }
   0xd   :  { %165 = vmatprep.subr.bf16.mxu1 %v1988_v21 }
  0x10   :  { %166 = vmatpush1.bf16.msra.mxu1 %v1990_v22 }
  0x11   :  { %1861 = vmatprep.subr.bf16.mxu1 %v2072_v49 }
  0x92   :  { %v54_v5 = vpop.xlane.xlu0 %53 }
  0x93   :  { %v59_v6 = vmul.f32 0.015625, %v54_v5 }
  0x95   :  { %v61_v7 = vsub.f32 %v2154_v1, %v59_v6 }
  0x96   :  { %v57_v8 = vpop.xlane.xlu0 %56 }
  0x97   :  { %v60_v9 = vmul.f32 0.015625, %v57_v8  ;;  %v63_v10 = vmul.f32 %v61_v7, %v61_v7 }
  0x99   :  { %v62_v11 = vsub.f32 %v2156_v2, %v60_v9  ;;  %v65_v12 = vsel %vm51_vm0, %v63_v10, 0.0 }
  0x9a   :  { %66 = vadd.xlane.f32.xlu1 %v65_v12 }
  0x9b   :  { %v64_v13 = vmul.f32 %v62_v11, %v62_v11 }
  0x9d   :  { %v68_v14 = vsel %vm51_vm0, %v64_v13, 0.0 }
  0x9e   :  { %69 = vadd.xlane.f32.xlu1 %v68_v14 }
 0x127   :  { %v67_v24 = vpop.xlane.xlu1 %66 }
 0x128   :  { %v71_v25 = vmul.f32 0.015625, %v67_v24 }
 0x12a   :  { %v73_v26 = vadd.f32 1e-05, %v71_v25 }
 0x12b   :  { %v70_v27 = vpop.xlane.xlu1 %69 }
 0x12c   :  { %2023 = vrsqrt.f32 %v73_v26  ;;  %v72_v28 = vmul.f32 0.015625, %v70_v27 }
 0x12e   :  { %v74_v29 = vadd.f32 1e-05, %v72_v28 }
 0x130   :  { %2025 = vrsqrt.f32 %v74_v29 }
 0x136   :  { %v2024_v30 = vpop.eup %2023 }
 0x137   :  { %v77_v31 = vmul.f32 %v2024_v30, %v61_v7 }
 0x139   :  { %v85_v35 = vmul.f32 %v1725_v32, %v77_v31 }
 0x13a   :  { %v2026_v33 = vpop.eup %2025 }
 0x13b   :  { %v78_v34 = vmul.f32 %v2026_v33, %v62_v11  ;;  %v93_v38 = vadd.f32 %v1726_v36, %v85_v35 }
 0x13d   :  { %v86_v37 = vmul.f32 %v1725_v32, %v78_v34 }
 0x13f   :  { %v94_v39 = vadd.f32 %v1726_v36, %v86_v37 }
 0x141   :  { %v95_v40 = vpack.c.bf16 %v94_v39, %v93_v38 }
 0x143   :  { %1735 = vmatmul.mubr.msk.bf16.vlgmr.msra.gmra.mrb[0].mxu1 %vm51_vm0, %v95_v40 }
 0x144   :  { %1863 = vmatprep.mubr.msk.bf16.mxu1 %vm2075_vm2, %v2072_v49 }
 0x216   :  { %v193_v47 = vpop.f32.mrb[0].mxu1 }
 0x217   :  { %v194_v50 = vadd.f32 %v193_v47, %v109_v46  ;;  %v195_v51 = vpop.f32.mrb[1].mxu1 }
 0x218   :  { %v197_v52 = vpop.f32.mrb[2].mxu1  ;;  %v2212_v56 = vadd.f32 %v195_v51, %v113_v48 }
 0x219   :  { %v1792_v53 = vpack.c.bf16 %v194_v50, %v194_v50  ;;  %v198_v54 = vadd.f32 %v197_v52, %v109_v46  ;;  %v199_v55 = vpop.f32.mrb[3].mxu1 }
 0x21a   :  { %v200_v57 = vadd.f32 %v199_v55, %v113_v48 }
 0x21b   :  { %v202_v58 = vpack.c.bf16 %v198_v54, %v194_v50  ;;  %v1794_v59 = vpack.c.bf16 %v198_v54, %v198_v54  ;;  %219 = vrot.lane.b32.xlu1 %v1792_v53, %s2073_s2  ;;  %209 = vrot.lane.b32.xlu0 %v1792_v53, %s2074_s4 }
 0x21c   :  { %v203_v60 = vpack.c.bf16 %v200_v57, %v2212_v56  ;;  %v2216_v61 = vpack.c.bf16 %v200_v57, %v200_v57 }
 0x21d   :  { %205 = vst.msk [vmem:[#allocation2] sm:$0xf] %vm204_vm1, %v202_v58  ;;  %266 = vst.msk [vmem:[#allocation2 + $0x10] sm:$0xf] %vm204_vm1, %v1794_v59 }
 0x21e   :  { %213 = vst.msk [vmem:[#allocation4] sm:$0xf] %vm204_vm1, %v203_v60  ;;  %276 = vst.msk [vmem:[#allocation4 + $0x10] sm:$0xf] %vm204_vm1, %v2216_v61 }
 0x21f   :  { %237 = vrot.lane.b32.xlu1 %v1792_v53, %s2076_s28  ;;  %252 = vrot.lane.b32.xlu0 %v1792_v53, %s2077_s29 }
 0x223   :  { %214 = vrot.lane.b32.xlu1 %v1792_v53, %s2078_s30  ;;  %267 = vrot.lane.b32.xlu0 %v1794_v59, %s2074_s4 }
 0x224   :  { %v322_v15 = vld [vmem:[#allocation2] sm:$0xf]  ;;  %v326_v28 = vld [vmem:[#allocation2 + $0x10] sm:$0xf] }
 0x225   :  { %v338_v34 = vld [vmem:[#allocation4] sm:$0xf] }
 0x226   :  { %v840_v36 = vsel %vm838_vm4, %v338_v34, 0 }
 0x227   :  { %232 = vrot.lane.b32.xlu1 %v1792_v53, %s2079_s14  ;;  %282 = vrot.lane.b32.xlu0 %v1794_v59, %s2073_s2 }
 0x22b   :  { %247 = vrot.lane.b32.xlu1 %v1792_v53, %s2080_s15  ;;  %277 = vrot.lane.b32.xlu0 %v1794_v59, %s2078_s30 }
 0x22f   :  { %297 = vrot.lane.b32.xlu1 %v1794_v59, %s2076_s28  ;;  %292 = vrot.lane.b32.xlu0 %v1794_v59, %s2079_s14 }
 0x233   :  { %312 = vrot.lane.b32.xlu1 %v1794_v59, %s2077_s29 }
 0x237   :  { %307 = vrot.lane.b32.xlu1 %v1794_v59, %s2080_s15 }
 0x28d   :  { %v220_v62 = vpop.permute.xlu1 %219  ;;  %v210_v63 = vpop.permute.xlu0 %209 }
 0x28e   :  { %223 = vst.msk [vmem:[#allocation3 + $0x4] sm:$0xf] %vm204_vm1, %v220_v62  ;;  %212 = vst.msk [vmem:[#allocation3] sm:$0xf] %vm204_vm1, %v210_v63 }
 0x291   :  { %v238_v0 = vpop.permute.xlu1 %237  ;;  %v253_v3 = vpop.permute.xlu0 %252 }
 0x292   :  { %241 = vst.msk [vmem:[#allocation3 + $0x8] sm:$0xf] %vm204_vm1, %v238_v0  ;;  %256 = vst.msk [vmem:[#allocation3 + $0xc] sm:$0xf] %vm204_vm1, %v253_v3 }
 0x295   :  { %v215_v4 = vpop.permute.xlu1 %214  ;;  %v268_v5 = vpop.permute.xlu0 %267  ;;  %v330_v6 = vld [vmem:[#allocation3] sm:$0xf]  ;;  %v331_v12 = vld [vmem:[#allocation3 + $0x4] sm:$0xf] }
 0x296   :  { %218 = vst.msk [vmem:[#allocation2 + $0x4] sm:$0xf] %vm204_vm1, %v215_v4  ;;  %271 = vst.msk [vmem:[#allocation3 + $0x10] sm:$0xf] %vm204_vm1, %v268_v5  ;;  %v351_v7 = vsel %vm346_vm3, %v330_v6, 0  ;;  %v397_v16 = vsel %vm346_vm3, %v331_v12, 0 }
 0x297   :  { %1862 = vmatpush3.bf16.xpose.msra.mxu1 %v351_v7 }
 0x298   :  { %1867 = vmatprep.subr.bf16.mxu1 %v2072_v49 }
 0x299   :  { %v233_v8 = vpop.permute.xlu1 %232  ;;  %v283_v9 = vpop.permute.xlu0 %282  ;;  %v332_v10 = vld [vmem:[#allocation3 + $0x8] sm:$0xf]  ;;  %v333_v22 = vld [vmem:[#allocation3 + $0xc] sm:$0xf] }
 0x29a   :  { %236 = vst.msk [vmem:[#allocation2 + $0x8] sm:$0xf] %vm204_vm1, %v233_v8  ;;  %286 = vst.msk [vmem:[#allocation3 + $0x14] sm:$0xf] %vm204_vm1, %v283_v9  ;;  %v443_v11 = vsel %vm346_vm3, %v332_v10, 0  ;;  %v489_v26 = vsel %vm346_vm3, %v333_v22, 0 }
 0x29b   :  { %1874 = vmatpush3.bf16.xpose.msra.mxu0 %v443_v11 }
 0x29c   :  { %1885 = vmatprep.subr.bf16.mxu0 %v2072_v49 }
 0x29d   :  { %v248_v13 = vpop.permute.xlu1 %247  ;;  %v278_v14 = vpop.permute.xlu0 %277  ;;  %v334_v17 = vld [vmem:[#allocation3 + $0x10] sm:$0xf]  ;;  %v323_v25 = vld [vmem:[#allocation2 + $0x4] sm:$0xf] }
 0x29e   :  { %251 = vst.msk [vmem:[#allocation2 + $0xc] sm:$0xf] %vm204_vm1, %v248_v13  ;;  %281 = vst.msk [vmem:[#allocation2 + $0x14] sm:$0xf] %vm204_vm1, %v278_v14  ;;  %1864 = vmatmul.mubr.msk.bf16.vlgmr.msra.gmra.mrb[4].mxu1 %vm346_vm3, %v322_v15  ;;  %v535_v21 = vsel %vm346_vm3, %v334_v17, 0 }
 0x29f   :  { %1868 = vmatpush3.bf16.xpose.msra.mxu1 %v397_v16  ;;  %1869 = vmatprep.mubr.msk.bf16.mxu1 %vm2075_vm2, %v2072_v49 }
 0x2a0   :  { %1879 = vmatprep.subr.bf16.mxu1 %v2072_v49 }
 0x2a1   :  { %v298_v18 = vpop.permute.xlu1 %297  ;;  %v293_v19 = vpop.permute.xlu0 %292  ;;  %v324_v20 = vld [vmem:[#allocation2 + $0x8] sm:$0xf]  ;;  %v335_v31 = vld [vmem:[#allocation3 + $0x14] sm:$0xf] }
 0x2a2   :  { %301 = vst.msk [vmem:[#allocation3 + $0x18] sm:$0xf] %vm204_vm1, %v298_v18  ;;  %296 = vst.msk [vmem:[#allocation2 + $0x18] sm:$0xf] %vm204_vm1, %v293_v19  ;;  %1876 = vmatmul.mubr.msk.bf16.vlgmr.msra.gmra.mrb[0].mxu0 %vm346_vm3, %v324_v20  ;;  %v581_v33 = vsel %vm346_vm3, %v335_v31, 0 }
 0x2a3   :  { %1886 = vmatpush3.bf16.xpose.msra.mxu0 %v535_v21  ;;  %1887 = vmatprep.mubr.msk.bf16.mxu0 %vm2075_vm2, %v2072_v49 }
 0x2a4   :  { %1897 = vmatprep.subr.bf16.mxu0 %v2072_v49 }
 0x2a5   :  { %v313_v24 = vpop.permute.xlu1 %312  ;;  %v325_v32 = vld [vmem:[#allocation2 + $0xc] sm:$0xf]  ;;  %v327_v38 = vld [vmem:[#allocation2 + $0x14] sm:$0xf] }
 0x2a6   :  { %316 = vst.msk [vmem:[#allocation3 + $0x1c] sm:$0xf] %vm204_vm1, %v313_v24  ;;  %1870 = vmatmul.mubr.msk.bf16.vlgmr.msra.gmra.mrb[8].mxu1 %vm346_vm3, %v323_v25 }
 0x2a7   :  { %1880 = vmatpush3.bf16.xpose.msra.mxu1 %v489_v26  ;;  %1881 = vmatprep.mubr.msk.bf16.mxu1 %vm2075_vm2, %v2072_v49 }
 0x2a8   :  { %1891 = vmatprep.subr.bf16.mxu1 %v2072_v49 }
 0x2a9   :  { %v308_v27 = vpop.permute.xlu1 %307  ;;  %v336_v29 = vld [vmem:[#allocation3 + $0x18] sm:$0xf] }
 0x2aa   :  { %311 = vst.msk [vmem:[#allocation2 + $0x1c] sm:$0xf] %vm204_vm1, %v308_v27  ;;  %1888 = vmatmul.mubr.msk.bf16.vlgmr.msra.gmra.mrb[4].mxu0 %vm346_vm3, %v326_v28  ;;  %v627_v30 = vsel %vm346_vm3, %v336_v29, 0  ;;  %v328_v35 = vld [vmem:[#allocation2 + $0x18] sm:$0xf] }
 0x2ab   :  { %1898 = vmatpush3.bf16.xpose.msra.mxu0 %v627_v30  ;;  %1899 = vmatprep.mubr.msk.bf16.mxu0 %vm2075_vm2, %v2072_v49 }
 0x2ac   :  { %1909 = vmatprep.subr.bf16.mxu0 %v2072_v49 }
 0x2ad   :  { %v337_v37 = vld [vmem:[#allocation3 + $0x1c] sm:$0xf] }
 0x2ae   :  { %1882 = vmatmul.mubr.msk.bf16.vlgmr.msra.gmra.mrb[12].mxu1 %vm346_vm3, %v325_v32  ;;  %v673_v39 = vsel %vm346_vm3, %v337_v37, 0 }
 0x2af   :  { %1892 = vmatpush3.bf16.xpose.msra.mxu1 %v581_v33  ;;  %1893 = vmatprep.mubr.msk.bf16.mxu1 %vm2075_vm2, %v2072_v49 }
 0x2b0   :  { %1903 = vmatprep.subr.bf16.mxu1 %v2072_v49 }
 0x2b1   :  { %v329_v40 = vld [vmem:[#allocation2 + $0x1c] sm:$0xf] }
 0x2b2   :  { %1900 = vmatmul.mubr.msk.bf16.vlgmr.msra.gmra.mrb[8].mxu0 %vm346_vm3, %v328_v35 }
 0x2b3   :  { %1910 = vmatpush3.bf16.msra.mxu0 %v840_v36  ;;  %1911 = vmatprep.mubr.msk.bf16.mxu0 %vm2075_vm2, %v2072_v49 }
 0x2b4   :  { %1921 = vmatprep.subr.bf16.mxu0 %v2072_v49 }
 0x2b6   :  { %1894 = vmatmul.mubr.msk.bf16.vlgmr.msra.gmra.mrb[16].mxu1 %vm346_vm3, %v327_v38 }
 0x2b7   :  { %1904 = vmatpush3.bf16.xpose.msra.mxu1 %v673_v39  ;;  %1905 = vmatprep.mubr.msk.bf16.mxu1 %vm2075_vm2, %v2072_v49 }
 0x2b8   :  { %1915 = vmatprep.subr.bf16.mxu1 %v2072_v49 }
 0x2be   :  { %1906 = vmatmul.mubr.msk.bf16.vlgmr.msra.gmra.mrb[20].mxu1 %vm346_vm3, %v329_v40 }
 0x2bf   :  { %1917 = vmatprep.mubr.msk.bf16.mxu1 %vm2075_vm2, %v2072_v49 }
 0x371   :  { %v387_v47 = vpop.f32.mrb[4].mxu1 }
 0x372   :  { %v715_v48 = vmul.f32 0.25, %v387_v47  ;;  %v1865_v50 = vpop.f32.mrb[5].mxu1 }
 0x373   :  { %v390_v51 = vpop.f32.mrb[6].mxu1  ;;  %v1793_v50 = vpack.c.bf16 %v2212_v56, %v2212_v56 }
 0x374   :  { %v1866_v52 = vpop.f32.mrb[7].mxu1  ;;  %v2302_v53 = vsel %vm2296_vm5, %v715_v48, -1e+30 }
 0x375   :  { %v479_v54 = vpop.f32.mrb[0].mxu0  ;;  %v739_v55 = vsel %vm738_vm6, %v2302_v53, -inf }
 0x376   :  { %v717_v41 = vmul.f32 0.25, %v479_v54  ;;  %v1877_v57 = vpop.f32.mrb[1].mxu0  ;;  %740 = vmax.xlane.f32.xlu0 %v739_v55 }
 0x377   :  { %v482_v58 = vpop.f32.mrb[2].mxu0 }
 0x378   :  { %v1878_v59 = vpop.f32.mrb[3].mxu0  ;;  %v732_v60 = vsel %vm2296_vm5, %v717_v41, -1e+30 }
 0x379   :  { %v433_v62 = vpop.f32.mrb[8].mxu1  ;;  %v745_v63 = vsel %vm738_vm6, %v732_v60, -inf }
 0x37a   :  { %v716_v0 = vmul.f32 0.25, %v433_v62  ;;  %746 = vmax.xlane.f32.xlu0 %v745_v63  ;;  %v1871_v3 = vpop.f32.mrb[9].mxu1 }
 0x37b   :  { %v436_v4 = vpop.f32.mrb[10].mxu1 }
 0x37c   :  { %v1872_v5 = vpop.f32.mrb[11].mxu1  ;;  %v731_v6 = vsel %vm2296_vm5, %v716_v0, -1e+30 }
 0x37d   :  { %v571_v7 = vpop.f32.mrb[4].mxu0  ;;  %v742_v8 = vsel %vm738_vm6, %v731_v6, -inf }
 0x37e   :  { %v1889_v9 = vpop.f32.mrb[5].mxu0  ;;  %743 = vmax.xlane.f32.xlu1 %v742_v8  ;;  %v719_v13 = vmul.f32 0.25, %v571_v7 }
 0x37f   :  { %v574_v10 = vpop.f32.mrb[6].mxu0 }
 0x380   :  { %v1890_v11 = vpop.f32.mrb[7].mxu0  ;;  %v734_v24 = vsel %vm2296_vm5, %v719_v13, -1e+30 }
 0x381   :  { %v525_v12 = vpop.f32.mrb[12].mxu1  ;;  %v751_v28 = vsel %vm738_vm6, %v734_v24, -inf }
 0x382   :  { %v718_v14 = vmul.f32 0.25, %v525_v12  ;;  %v1883_v15 = vpop.f32.mrb[13].mxu1 }
 0x383   :  { %v528_v16 = vpop.f32.mrb[14].mxu1 }
 0x384   :  { %v1884_v17 = vpop.f32.mrb[15].mxu1  ;;  %v733_v18 = vsel %vm2296_vm5, %v718_v14, -1e+30 }
 0x385   :  { %v663_v19 = vpop.f32.mrb[8].mxu0  ;;  %v748_v20 = vsel %vm738_vm6, %v733_v18, -inf }
 0x386   :  { %v721_v21 = vmul.f32 0.25, %v663_v19  ;;  %v1901_v22 = vpop.f32.mrb[9].mxu0  ;;  %749 = vmax.xlane.f32.xlu0 %v748_v20 }
 0x387   :  { %v666_v25 = vpop.f32.mrb[10].mxu0 }
 0x388   :  { %v1902_v26 = vpop.f32.mrb[11].mxu0  ;;  %v736_v31 = vsel %vm2296_vm5, %v721_v21, -1e+30 }
 0x389   :  { %v617_v27 = vpop.f32.mrb[16].mxu1  ;;  %v757_v35 = vsel %vm738_vm6, %v736_v31, -inf }
 0x38a   :  { %v720_v29 = vmul.f32 0.25, %v617_v27  ;;  %752 = vmax.xlane.f32.xlu0 %v751_v28  ;;  %v1895_v30 = vpop.f32.mrb[17].mxu1 }
 0x38b   :  { %v620_v32 = vpop.f32.mrb[18].mxu1 }
 0x38c   :  { %v1896_v33 = vpop.f32.mrb[19].mxu1  ;;  %v735_v34 = vsel %vm2296_vm5, %v720_v29, -1e+30 }
 0x38d   :  { %v754_v36 = vsel %vm738_vm6, %v735_v34, -inf }
 0x38e   :  { %758 = vmax.xlane.f32.xlu0 %v757_v35  ;;  %755 = vmax.xlane.f32.xlu1 %v754_v36 }
 0x391   :  { %v709_v37 = vpop.f32.mrb[20].mxu1 }
 0x392   :  { %v722_v38 = vmul.f32 0.25, %v709_v37  ;;  %v1907_v39 = vpop.f32.mrb[21].mxu1 }
 0x393   :  { %v712_v40 = vpop.f32.mrb[22].mxu1 }
 0x394   :  { %v1908_v44 = vpop.f32.mrb[23].mxu1  ;;  %v2326_v47 = vsel %vm2296_vm5, %v722_v38, -1e+30 }
 0x395   :  { %v760_v48 = vsel %vm738_vm6, %v2326_v47, -inf }
 0x396   :  { %761 = vmax.xlane.f32.xlu1 %v760_v48 }
 0x3a4   :  { %227 = vrot.lane.b32.xlu0 %v1793_v50, %s2078_s30 }
 0x403   :  { %v741_v51 = vpop.xlane.xlu0 %740 }
 0x404   :  { %v763_v52 = vsub.f32 %v2302_v53, %v741_v51 }
 0x406   :  { %v771_v54 = vmul.f32 1.442695, %v763_v52 }
 0x407   :  { %v747_v55 = vpop.xlane.xlu0 %746 }
 0x408   :  { %2027 = vpow2.f32 %v771_v54  ;;  %v765_v41 = vsub.f32 %v732_v60, %v747_v55 }
 0x40a   :  { %v775_v57 = vmul.f32 1.442695, %v765_v41 }
 0x40b   :  { %v744_v46 = vpop.xlane.xlu1 %743 }
 0x40c   :  { %2029 = vpow2.f32 %v775_v57  ;;  %v764_v58 = vsub.f32 %v731_v6, %v744_v46 }
 0x40e   :  { %v773_v59 = vmul.f32 1.442695, %v764_v58 }
 0x410   :  { %2031 = vpow2.f32 %v773_v59 }
 0x412   :  { %v2028_v62 = vpop.eup %2027 }
 0x413   :  { %v750_v63 = vpop.xlane.xlu0 %749  ;;  %v787_v0 = vsel %vm738_vm6, %v2028_v62, 0.0 }
 0x414   :  { %v766_v56 = vsub.f32 %v733_v18, %v750_v63  ;;  %788 = vadd.xlane.f32.xlu0 %v787_v0 }
 0x416   :  { %v2335_v3 = vpop.eup %2029  ;;  %v777_v4 = vmul.f32 1.442695, %v766_v56 }
 0x417   :  { %v753_v53 = vpop.xlane.xlu0 %752  ;;  %v793_v5 = vsel %vm738_vm6, %v2335_v3, 0.0 }
 0x418   :  { %2033 = vpow2.f32 %v777_v4  ;;  %v767_v60 = vsub.f32 %v734_v24, %v753_v53  ;;  %794 = vadd.xlane.f32.xlu0 %v793_v5 }
 0x41a   :  { %v2032_v7 = vpop.eup %2031  ;;  %v779_v6 = vmul.f32 1.442695, %v767_v60 }
 0x41b   :  { %v759_v8 = vpop.xlane.xlu0 %758  ;;  %v756_v9 = vpop.xlane.xlu1 %755  ;;  %v790_v10 = vsel %vm738_vm6, %v2032_v7, 0.0 }
 0x41c   :  { %2035 = vpow2.f32 %v779_v6  ;;  %v769_v11 = vsub.f32 %v736_v31, %v759_v8  ;;  %v768_v12 = vsub.f32 %v735_v34, %v756_v9  ;;  %791 = vadd.xlane.f32.xlu1 %v790_v10  ;;  %v342_v6 = vld [vmem:[#allocation4 + $0x10] sm:$0xf] }
 0x41e   :  { %v783_v13 = vmul.f32 1.442695, %v769_v11  ;;  %v781_v14 = vmul.f32 1.442695, %v768_v12 }
 0x41f   :  { %v228_v15 = vpop.permute.xlu0 %227 }
 0x420   :  { %2037 = vpow2.f32 %v783_v13  ;;  %231 = vst.msk [vmem:[#allocation4 + $0x4] sm:$0xf] %vm204_vm1, %v228_v15 }
 0x421   :  { %2039 = vpow2.f32 %v781_v14 }
 0x422   :  { %v2034_v16 = vpop.eup %2033 }
 0x423   :  { %v796_v17 = vsel %vm738_vm6, %v2034_v16, 0.0  ;;  %v762_v27 = vpop.xlane.xlu1 %761 }
 0x424   :  { %797 = vadd.xlane.f32.xlu1 %v796_v17  ;;  %v770_v28 = vsub.f32 %v2326_v47, %v762_v27 }
 0x426   :  { %v2342_v18 = vpop.eup %2035  ;;  %v785_v29 = vmul.f32 1.442695, %v770_v28 }
 0x427   :  { %v799_v19 = vsel %vm738_vm6, %v2342_v18, 0.0  ;;  %v339_v20 = vld [vmem:[#allocation4 + $0x4] sm:$0xf] }
 0x428   :  { %800 = vadd.xlane.f32.xlu0 %v799_v19  ;;  %v886_v21 = vsel %vm838_vm4, %v339_v20, 0  ;;  %2041 = vpow2.f32 %v785_v29 }
 0x429   :  { %1916 = vmatpush3.bf16.msra.mxu1 %v886_v21 }
 0x42a   :  { %v2347_v22 = vpop.eup %2037  ;;  %1927 = vmatprep.subr.bf16.mxu1 %v2072_v49 }
 0x42b   :  { %v805_v24 = vsel %vm738_vm6, %v2347_v22, 0.0  ;;  %v2352_v25 = vpop.eup %2039 }
 0x42c   :  { %806 = vadd.xlane.f32.xlu1 %v805_v24  ;;  %v802_v26 = vsel %vm738_vm6, %v2352_v25, 0.0 }
 0x430   :  { %803 = vadd.xlane.f32.xlu1 %v802_v26 }
 0x432   :  { %v2365_v30 = vpop.eup %2041 }
 0x433   :  { %v808_v31 = vsel %vm738_vm6, %v2365_v30, 0.0 }
 0x43e   :  { %257 = vrot.lane.b32.xlu0 %v1793_v50, %s2080_s15 }
 0x441   :  { %242 = vrot.lane.b32.xlu1 %v1793_v50, %s2079_s14 }
 0x442   :  { %287 = vrot.lane.b32.xlu0 %v2216_v61, %s2078_s30 }
 0x446   :  { %302 = vrot.lane.b32.xlu0 %v2216_v61, %s2079_s14 }
 0x44a   :  { %317 = vrot.lane.b32.xlu0 %v2216_v61, %s2080_s15 }
 0x465   :  { %809 = vadd.xlane.f32.xlu1 %v808_v31 }
 0x4a1   :  { %v789_v32 = vpop.xlane.xlu0 %788 }
 0x4a2   :  { %2043 = vrcp.f32 %v789_v32 }
 0x4a5   :  { %v795_v37 = vpop.xlane.xlu0 %794 }
 0x4a9   :  { %v792_v33 = vpop.xlane.xlu1 %791 }
 0x4aa   :  { %2045 = vrcp.f32 %v792_v33 }
 0x4ac   :  { %v2044_v34 = vpop.eup %2043 }
 0x4ad   :  { %v819_v35 = vmul.f32 %v2044_v34, %v2028_v62 }
 0x4af   :  { %v827_v36 = vpack.c.bf16 %v819_v35, %v819_v35 }
 0x4b1   :  { %1912 = vmatmul.mubr.msk.bf16.vlgmr.msra.gmra.mrb[12].mxu0 %vm738_vm6, %v827_v36  ;;  %v798_v61 = vpop.xlane.xlu1 %797 }
 0x4b2   :  { %1923 = vmatprep.mubr.msk.bf16.mxu0 %vm2075_vm2, %v2072_v49  ;;  %2047 = vrcp.f32 %v798_v61 }
 0x4b3   :  { %2049 = vrcp.f32 %v795_v37 }
 0x4b4   :  { %v2046_v38 = vpop.eup %2045 }
 0x4b5   :  { %v820_v39 = vmul.f32 %v2046_v38, %v2032_v7  ;;  %v801_v40 = vpop.xlane.xlu0 %800 }
 0x4b7   :  { %v828_v44 = vpack.c.bf16 %v820_v39, %v820_v39 }
 0x4b9   :  { %v258_v47 = vpop.permute.xlu0 %257  ;;  %1918 = vmatmul.mubr.msk.bf16.vlgmr.msra.gmra.mrb[24].mxu1 %vm738_vm6, %v828_v44  ;;  %v807_v48 = vpop.xlane.xlu1 %806 }
 0x4ba   :  { %261 = vst.msk [vmem:[#allocation4 + $0xc] sm:$0xf] %vm204_vm1, %v258_v47  ;;  %1929 = vmatprep.mubr.msk.bf16.mxu1 %vm2075_vm2, %v2072_v49 }
 0x4bc   :  { %v2048_v50 = vpop.eup %2047 }
 0x4bd   :  { %v288_v51 = vpop.permute.xlu0 %287  ;;  %v804_v52 = vpop.xlane.xlu1 %803  ;;  %v822_v54 = vmul.f32 %v2048_v50, %v2034_v16 }
 0x4be   :  { %291 = vst.msk [vmem:[#allocation4 + $0x14] sm:$0xf] %vm204_vm1, %v288_v51  ;;  %2051 = vrcp.f32 %v804_v52  ;;  %v2050_v59 = vpop.eup %2049 }
 0x4bf   :  { %2053 = vrcp.f32 %v801_v40  ;;  %v830_v58 = vpack.c.bf16 %v822_v54, %v822_v54  ;;  %v821_v4 = vmul.f32 %v2050_v59, %v2335_v3  ;;  %v1024_v3 = vsel %vm838_vm4, %v342_v6, 0  ;;  %v1991_v59 = vld [vmem:[%s2555_s5] sm:$0xff]   ;;  %v1994_v6 = vld [vmem:[%s2555_s5 + $0x18] sm:$0xff]  }
 0x4c0   :  { %2055 = vrcp.f32 %v807_v48 }
 0x4c1   :  { %v303_v55 = vpop.permute.xlu0 %302  ;;  %v243_v41 = vpop.permute.xlu1 %242  ;;  %v341_v57 = vld [vmem:[#allocation4 + $0xc] sm:$0xf]  ;;  %v829_v8 = vpack.c.bf16 %v821_v4, %v821_v4 }
 0x4c2   :  { %306 = vst.msk [vmem:[#allocation4 + $0x18] sm:$0xf] %vm204_vm1, %v303_v55  ;;  %246 = vst.msk [vmem:[#allocation4 + $0x8] sm:$0xf] %vm204_vm1, %v243_v41  ;;  %v978_v46 = vsel %vm838_vm4, %v341_v57, 0 }
 0x4c3   :  { %1928 = vmatpush3.bf16.msra.mxu1 %v978_v46 }
 0x4c4   :  { %1939 = vmatprep.subr.bf16.mxu1 %v2072_v49 }
 0x4c5   :  { %v318_v62 = vpop.permute.xlu0 %317  ;;  %v343_v63 = vld [vmem:[#allocation4 + $0x14] sm:$0xf] }
 0x4c6   :  { %321 = vst.msk [vmem:[#allocation4 + $0x1c] sm:$0xf] %vm204_vm1, %v318_v62  ;;  %1930 = vmatmul.mubr.msk.bf16.vlgmr.msra.gmra.mrb[28].mxu1 %vm738_vm6, %v830_v58  ;;  %v1070_v0 = vsel %vm838_vm4, %v343_v63, 0  ;;  %v1992_v62 = vld [vmem:[%s2555_s5 + $0x8] sm:$0xff]  }
 0x4c7   :  { %1940 = vmatpush3.bf16.msra.mxu1 %v1070_v0  ;;  %1941 = vmatprep.mubr.msk.bf16.mxu1 %vm2075_vm2, %v2072_v49 }
 0x4c8   :  { %v2052_v56 = vpop.eup %2051  ;;  %1951 = vmatprep.subr.bf16.mxu1 %v2072_v49 }
 0x4c9   :  { %v824_v53 = vmul.f32 %v2052_v56, %v2352_v25  ;;  %v340_v5 = vld [vmem:[#allocation4 + $0x8] sm:$0xf]  ;;  %v2054_v9 = vpop.eup %2053  ;;  %v344_v13 = vld [vmem:[#allocation4 + $0x18] sm:$0xf] }
 0x4ca   :  { %v932_v60 = vsel %vm838_vm4, %v340_v5, 0  ;;  %v823_v12 = vmul.f32 %v2054_v9, %v2342_v18  ;;  %v2056_v15 = vpop.eup %2055  ;;  %v1116_v16 = vsel %vm838_vm4, %v344_v13, 0 }
 0x4cb   :  { %1922 = vmatpush3.bf16.msra.mxu0 %v932_v60  ;;  %v832_v7 = vpack.c.bf16 %v824_v53, %v824_v53  ;;  %v825_v17 = vmul.f32 %v2056_v15, %v2347_v22 }
 0x4cc   :  { %1933 = vmatprep.subr.bf16.mxu0 %v2072_v49  ;;  %v831_v14 = vpack.c.bf16 %v823_v12, %v823_v12 }
 0x4cd   :  { %v345_v10 = vld [vmem:[#allocation4 + $0x1c] sm:$0xf]  ;;  %v833_v18 = vpack.c.bf16 %v825_v17, %v825_v17 }
 0x4ce   :  { %1924 = vmatmul.mubr.msk.bf16.vlgmr.msra.gmra.mrb[16].mxu0 %vm738_vm6, %v829_v8  ;;  %1942 = vmatmul.mubr.msk.bf16.vlgmr.msra.gmra.mrb[32].mxu1 %vm738_vm6, %v832_v7  ;;  %v1162_v11 = vsel %vm838_vm4, %v345_v10, 0  ;;  %v1993_v7 = vld [vmem:[%s2555_s5 + $0x10] sm:$0xff]  }
 0x4cf   :  { %1934 = vmatpush3.bf16.msra.mxu0 %v1024_v3  ;;  %1952 = vmatpush3.bf16.msra.mxu1 %v1162_v11 }
 0x4d0   :  { %1935 = vmatprep.mubr.msk.bf16.mxu0 %vm2075_vm2, %v2072_v49  ;;  %1945 = vmatprep.subr.bf16.mxu0 %v2072_v49 }
 0x4d1   :  { %1953 = vmatprep.mubr.msk.bf16.mxu1 %vm2075_vm2, %v2072_v49 }
 0x4d6   :  { %1936 = vmatmul.mubr.msk.bf16.vlgmr.msra.gmra.mrb[20].mxu0 %vm738_vm6, %v831_v14 }
 0x4d7   :  { %1946 = vmatpush3.bf16.msra.mxu0 %v1116_v16  ;;  %1947 = vmatprep.mubr.msk.bf16.mxu0 %vm2075_vm2, %v2072_v49 }
 0x4d8   :  { %1957 = vmatprep.subr.bf16.mxu0 %v2072_v49 }
 0x4de   :  { %1948 = vmatmul.mubr.msk.bf16.vlgmr.msra.gmra.mrb[24].mxu0 %vm738_vm6, %v833_v18 }
 0x4df   :  { %1965 = vmatprep.mubr.msk.bf16.mxu0 %vm2075_vm2, %v2072_v49  ;;  %1958 = vmatpush3.bf16.msra.mxu0 %v1991_v59  ;;  %v1762_v59 = vld [vmem:[%s2558_s7] ss:$0 sm:$0xff] }
 0x4e0   :  { %1959 = vmatprep.subr.bf16.mxu0 %v2072_v49 }
 0x4e3   :  { %1960 = vmatpush3.bf16.msra.mxu0 %v1992_v62 }
 0x4e4   :  { %1961 = vmatprep.subr.bf16.mxu0 %v2072_v49 }
 0x4e7   :  { %1962 = vmatpush3.bf16.msra.mxu0 %v1993_v7  ;;  %v2007_v7 = vld [vmem:[%s2560_s11 + $0x40] sm:$0xff]  }
 0x4e8   :  { %1963 = vmatprep.subr.bf16.mxu0 %v2072_v49 }
 0x4eb   :  { %1964 = vmatpush3.bf16.msra.mxu0 %v1994_v6  ;;  %v2008_v6 = vld [vmem:[%s2560_s11] sm:$0xff]  }
 0x4ec   :  { %1839 = vmatprep.subr.bf16.mxu0 %v2007_v7 }
 0x4f2   :  { %v810_v19 = vpop.xlane.xlu1 %809 }
 0x4f3   :  { %2057 = vrcp.f32 %v810_v19  ;;  %v1756_v19 = vld [vmem:[%s2556_s6] ss:$0 sm:$0xff] }
 0x4fd   :  { %v2058_v20 = vpop.eup %2057 }
 0x4fe   :  { %v826_v21 = vmul.f32 %v2058_v20, %v2365_v30 }
 0x500   :  { %v834_v24 = vpack.c.bf16 %v826_v21, %v826_v21 }
 0x502   :  { %1954 = vmatmul.mubr.msk.bf16.vlgmr.msra.gmra.mrb[36].mxu1 %vm738_vm6, %v834_v24 }
 0x503   :  { %1483 = vmatprep.mubr.bf16.mxu1 %v2071_v23 }
 0x584   :  { %v876_v25 = vpop.f32.mrb[12].mxu0 }
 0x585   :  { %v1204_v22 = vpack.c.bf16 %v876_v25, %v876_v25  ;;  %v1913_v26 = vpop.f32.mrb[13].mxu0 }
 0x586   :  { %v879_v27 = vpop.f32.mrb[14].mxu0 }
 0x587   :  { %1212 = vst.msk [vmem:[#allocation5] sm:$0xf] %vm204_vm1, %v1204_v22  ;;  %v1914_v28 = vpop.f32.mrb[15].mxu0 }
 0x58c   :  { %v922_v29 = vpop.f32.mrb[24].mxu1 }
 0x58d   :  { %v1205_v31 = vpack.c.bf16 %v922_v29, %v922_v29  ;;  %v1919_v32 = vpop.f32.mrb[25].mxu1 }
 0x58e   :  { %v925_v33 = vpop.f32.mrb[26].mxu1 }
 0x58f   :  { %1214 = vrot.lane.b32.xlu0 %v1205_v31, %s2077_s29  ;;  %v1920_v34 = vpop.f32.mrb[27].mxu1 }
 0x599   :  { %v1014_v30 = vpop.f32.mrb[28].mxu1 }
 0x59a   :  { %v1931_v35 = vpop.f32.mrb[29].mxu1  ;;  %v1207_v60 = vpack.c.bf16 %v1014_v30, %v1014_v30 }
 0x59b   :  { %v1017_v36 = vpop.f32.mrb[30].mxu1 }
 0x59c   :  { %v1932_v37 = vpop.f32.mrb[31].mxu1 }
 0x5a1   :  { %v968_v61 = vpop.f32.mrb[16].mxu0  ;;  %v1106_v23 = vpop.f32.mrb[32].mxu1 }
 0x5a2   :  { %v1206_v38 = vpack.c.bf16 %v968_v61, %v968_v61  ;;  %v1209_v39 = vpack.c.bf16 %v1106_v23, %v1106_v23  ;;  %v1925_v40 = vpop.f32.mrb[17].mxu0  ;;  %v1943_v44 = vpop.f32.mrb[33].mxu1  ;;  %v1997_v23 = vld [vmem:[%s2557_s9 + $0x4] ss:$8 sps:$4 sm:$0xff]  }
 0x5a3   :  { %v971_v47 = vpop.f32.mrb[18].mxu0  ;;  %v1109_v48 = vpop.f32.mrb[34].mxu1  ;;  %1451 = vmatprep.subr.bf16.mxu1 %v1997_v23  ;;  %v1998_v40 = vld [vmem:[%s2557_s9 + $0x10] ss:$8 sps:$4 sm:$0xff]   ;;  %v2003_v44 = vld [vmem:[%s2557_s9 + $0x24] ss:$8 sps:$4 sm:$0xff]  }
 0x5a4   :  { %v1926_v50 = vpop.f32.mrb[19].mxu0  ;;  %1220 = vrot.lane.b32.xlu0 %v1206_v38, %s2076_s28  ;;  %v1944_v51 = vpop.f32.mrb[35].mxu1  ;;  %v1237_v52 = vrot.slane %v1209_v39, 4  ;;  %v1995_v38 = vld [vmem:[%s2557_s9] ss:$8 sps:$4 sm:$0xff]  }
 0x5a5   :  { %1452 = vmatpush1.bf16.msra.mxu1 %v1995_v38  ;;  %v2000_v39 = vld [vmem:[%s2557_s9 + $0x14] ss:$8 sps:$4 sm:$0xff]   ;;  %v2001_v47 = vld [vmem:[%s2557_s9 + $0x20] ss:$8 sps:$4 sm:$0xff]   ;;  %v2004_v48 = vld [vmem:[%s2557_s9 + $0x30] ss:$8 sps:$4 sm:$0xff]  }
 0x5a6   :  { %1453 = vmatprep.subr.bf16.mxu1 %v2000_v39  ;;  %v2006_v50 = vld [vmem:[%s2557_s9 + $0x34] ss:$8 sps:$4 sm:$0xff]  }
 0x5a8   :  { %1238 = vrot.lane.b32.xlu0 %v1237_v52, %s2077_s29 }
 0x5a9   :  { %v1060_v54 = vpop.f32.mrb[20].mxu0  ;;  %1454 = vmatpush1.bf16.msra.mxu1 %v1998_v40 }
 0x5aa   :  { %v1208_v55 = vpack.c.bf16 %v1060_v54, %v1060_v54  ;;  %v1937_v41 = vpop.f32.mrb[21].mxu0  ;;  %1455 = vmatprep.subr.bf16.mxu1 %v2003_v44 }
 0x5ab   :  { %v1063_v57 = vpop.f32.mrb[22].mxu0 }
 0x5ac   :  { %v1232_v46 = vrot.slane %v1208_v55, 4  ;;  %v1938_v58 = vpop.f32.mrb[23].mxu0 }
 0x5ad   :  { %1456 = vmatpush1.bf16.msra.mxu1 %v2001_v47 }
 0x5ae   :  { %1235 = vst.msk [vmem:[#allocation5] sm:$0xf0] %vm1234_vm7, %v1232_v46  ;;  %1457 = vmatprep.subr.bf16.mxu1 %v2006_v50 }
 0x5b1   :  { %v1152_v63 = vpop.f32.mrb[24].mxu0  ;;  %1458 = vmatpush1.bf16.msra.mxu1 %v2004_v48 }
 0x5b2   :  { %v1210_v0 = vpack.c.bf16 %v1152_v63, %v1152_v63  ;;  %v1949_v56 = vpop.f32.mrb[25].mxu0 }
 0x5b3   :  { %v1155_v4 = vpop.f32.mrb[26].mxu0  ;;  %v1763_v56 = vld [vmem:[%s2559_s8] ss:$0 sm:$0xff] }
 0x5b4   :  { %v1244_v53 = vrot.slane %v1210_v0, 4  ;;  %v1950_v5 = vpop.f32.mrb[27].mxu0 }
 0x5b6   :  { %1245 = vrot.lane.b32.xlu0 %v1244_v53, %s2076_s28 }
 0x5ba   :  { %1226 = vrot.lane.b32.xlu0 %v1207_v60, %s2073_s2 }
 0x5d5   :  { %v1198_v8 = vpop.f32.mrb[36].mxu1 }
 0x5d6   :  { %v1211_v9 = vpack.c.bf16 %v1198_v8, %v1198_v8  ;;  %v1955_v10 = vpop.f32.mrb[37].mxu1  ;;  %v2009_v8 = vld [vmem:[%s2560_s11 + $0x48] sm:$0xff]  }
 0x5d7   :  { %v1201_v3 = vpop.f32.mrb[38].mxu1  ;;  %v2011_v10 = vld [vmem:[%s2560_s11 + $0x50] sm:$0xff]  }
 0x5d8   :  { %v1251_v11 = vrot.slane %v1211_v9, 4  ;;  %v1956_v12 = vpop.f32.mrb[39].mxu1  ;;  %v2010_v9 = vld [vmem:[%s2560_s11 + $0x8] sm:$0xff]   ;;  %v2012_v3 = vld [vmem:[%s2560_s11 + $0x10] sm:$0xff]  }
 0x5d9   :  { %v2014_v12 = vld [vmem:[%s2560_s11 + $0x18] sm:$0xff]  }
 0x5da   :  { %1252 = vrot.lane.b32.xlu1 %v1251_v11, %s2073_s2  ;;  %v2013_v11 = vld [vmem:[%s2560_s11 + $0x58] sm:$0xff]  }
 0x601   :  { %v1215_v13 = vpop.permute.xlu0 %1214 }
 0x602   :  { %1218 = vst.msk [vmem:[#allocation5] sm:$0xf] %vm1217_vm8, %v1215_v13  ;;  %v2015_v13 = vld [vmem:[%s2560_s11 + $0x60] sm:$0xff]  }
 0x616   :  { %v1221_v14 = vpop.permute.xlu0 %1220 }
 0x617   :  { %1224 = vst.msk [vmem:[#allocation5] sm:$0xf] %vm1223_vm9, %v1221_v14  ;;  %v2016_v14 = vld [vmem:[%s2560_s11 + $0x20] sm:$0xff]  }
 0x61a   :  { %v1239_v15 = vpop.permute.xlu0 %1238 }
 0x61b   :  { %1242 = vst.msk [vmem:[#allocation5] sm:$0xf0] %vm1241_vm10, %v1239_v15  ;;  %v2017_v15 = vld [vmem:[%s2560_s11 + $0x68] sm:$0xff]  }
 0x628   :  { %v1246_v49 = vpop.permute.xlu0 %1245 }
 0x629   :  { %1249 = vst.msk [vmem:[#allocation5] sm:$0xf0] %vm1248_vm11, %v1246_v49  ;;  %v2018_v49 = vld [vmem:[%s2560_s11 + $0x28] sm:$0xff]  }
 0x62c   :  { %v1227_v16 = vpop.permute.xlu0 %1226 }
 0x62d   :  { %1230 = vst.msk [vmem:[#allocation5] sm:$0xf] %vm1229_vm12, %v1227_v16  ;;  %v2019_v16 = vld [vmem:[%s2560_s11 + $0x70] sm:$0xff]  }
 0x64c   :  { %v1253_v17 = vpop.permute.xlu1 %1252 }
 0x64d   :  { %1256 = vst.msk [vmem:[#allocation5] sm:$0xf0] %vm1255_vm13, %v1253_v17  ;;  %v2020_v17 = vld [vmem:[%s2560_s11 + $0x30] sm:$0xff]  }
 0x654   :  { %v1257_v18 = vld [vmem:[#allocation5] sm:$0xff] }
 0x655   :  { %1966 = vmatmul.mubr.msk.bf16.vlgmr.msra.gmra.mrb[28].mxu0 %vm51_vm0, %v1257_v18  ;;  %v2021_v18 = vld [vmem:[%s2560_s11 + $0x78] sm:$0xff]  }
 0x656   :  { %1840 = vmatpush3.bf16.msra.mxu0 %v2008_v6 }
 0x657   :  { %1841 = vmatprep.subr.bf16.mxu0 %v2009_v8 }
 0x65a   :  { %1842 = vmatpush3.bf16.msra.mxu0 %v2010_v9 }
 0x65b   :  { %1843 = vmatprep.subr.bf16.mxu0 %v2011_v10  ;;  %v1773_v10 = vld [vmem:[%s2562_s12] ss:$0 sm:$0xff] }
 0x65e   :  { %1844 = vmatpush3.bf16.msra.mxu0 %v2012_v3 }
 0x65f   :  { %1845 = vmatprep.subr.bf16.mxu0 %v2013_v11 }
 0x662   :  { %1846 = vmatpush3.bf16.msra.mxu0 %v2014_v12 }
 0x663   :  { %1847 = vmatprep.subr.bf16.mxu0 %v2015_v13 }
 0x666   :  { %1848 = vmatpush3.bf16.msra.mxu0 %v2016_v14 }
 0x667   :  { %1849 = vmatprep.subr.bf16.mxu0 %v2017_v15 }
 0x66a   :  { %1850 = vmatpush3.bf16.msra.mxu0 %v2018_v49 }
 0x66b   :  { %1851 = vmatprep.subr.bf16.mxu0 %v2019_v16 }
 0x66e   :  { %1852 = vmatpush3.bf16.msra.mxu0 %v2020_v17 }
 0x66f   :  { %1853 = vmatprep.subr.bf16.mxu0 %v2021_v18 }
 0x728   :  { %v1334_v20 = vpop.f32.mrb[28].mxu0 }
 0x729   :  { %v1335_v21 = vadd.f32 %v1756_v19, %v1334_v20  ;;  %v1967_v24 = vpop.f32.mrb[29].mxu0  ;;  %v1396_v20 = vld [vmem:[%s2561_s10] sm:$0x3] }
 0x72a   :  { %v1337_v25 = vpop.f32.mrb[30].mxu0  ;;  %v1405_v24 = vrot.slane %v1396_v20, %v112_v45 }
 0x72b   :  { %v2440_v22 = vadd.f32 %v2154_v1, %v1335_v21  ;;  %v1338_v26 = vadd.f32 %v1756_v19, %v1337_v25  ;;  %v1968_v27 = vpop.f32.mrb[31].mxu0  ;;  %v2022_v19 = vld [vmem:[%s2560_s11 + $0x38] sm:$0xff]   ;;  %v1401_v21 = vrot.slane %v1396_v20, %v108_v43 }
 0x72c   :  { %1854 = vmatpush3.bf16.msra.mxu0 %v2022_v19 }
 0x72d   :  { %v2443_v28 = vadd.f32 %v2156_v2, %v1338_v26  ;;  %v1345_v29 = vsel %vm51_vm0, %v2440_v22, 0.0 }
 0x72e   :  { %1346 = vadd.xlane.f32.xlu0 %v1345_v29 }
 0x72f   :  { %v1348_v31 = vsel %vm51_vm0, %v2443_v28, 0.0 }
 0x730   :  { %1349 = vadd.xlane.f32.xlu1 %v1348_v31 }
 0x7bb   :  { %v1347_v32 = vpop.xlane.xlu0 %1346 }
 0x7bc   :  { %v1351_v33 = vmul.f32 0.015625, %v1347_v32 }
 0x7bd   :  { %v1350_v34 = vpop.xlane.xlu1 %1349 }
 0x7be   :  { %v1353_v30 = vsub.f32 %v2440_v22, %v1351_v33  ;;  %v1352_v1 = vmul.f32 0.015625, %v1350_v34 }
 0x7c0   :  { %v1354_v35 = vsub.f32 %v2443_v28, %v1352_v1  ;;  %v1355_v36 = vmul.f32 %v1353_v30, %v1353_v30 }
 0x7c2   :  { %v1357_v2 = vsel %vm51_vm0, %v1355_v36, 0.0  ;;  %v1356_v37 = vmul.f32 %v1354_v35, %v1354_v35 }
 0x7c3   :  { %1358 = vadd.xlane.f32.xlu0 %v1357_v2 }
 0x7c4   :  { %v1360_v61 = vsel %vm51_vm0, %v1356_v37, 0.0 }
 0x7c7   :  { %1361 = vadd.xlane.f32.xlu0 %v1360_v61 }
 0x850   :  { %v1359_v51 = vpop.xlane.xlu0 %1358 }
 0x851   :  { %v1363_v52 = vmul.f32 0.015625, %v1359_v51 }
 0x853   :  { %v1365_v54 = vadd.f32 1e-05, %v1363_v52 }
 0x854   :  { %v1362_v55 = vpop.xlane.xlu0 %1361 }
 0x855   :  { %2059 = vrsqrt.f32 %v1365_v54  ;;  %v1364_v41 = vmul.f32 0.015625, %v1362_v55 }
 0x857   :  { %v1366_v57 = vadd.f32 1e-05, %v1364_v41 }
 0x859   :  { %2061 = vrsqrt.f32 %v1366_v57 }
 0x85f   :  { %v2060_v46 = vpop.eup %2059 }
 0x860   :  { %v1369_v58 = vmul.f32 %v2060_v46, %v1353_v30 }
 0x862   :  { %v1377_v63 = vmul.f32 %v1762_v59, %v1369_v58 }
 0x863   :  { %v2062_v62 = vpop.eup %2061 }
 0x864   :  { %v1370_v0 = vmul.f32 %v2062_v62, %v1354_v35  ;;  %v1385_v53 = vadd.f32 %v1763_v56, %v1377_v63 }
 0x866   :  { %v1378_v4 = vmul.f32 %v1762_v59, %v1370_v0 }
 0x868   :  { %v1386_v5 = vadd.f32 %v1763_v56, %v1378_v4 }
 0x86a   :  { %v1387_v60 = vpack.c.bf16 %v1386_v5, %v1385_v53 }
 0x86c   :  { %1772 = vmatmul.mubr.msk.bf16.vlgmr.msra.gmra.mrb[40].mxu1 %vm51_vm0, %v1387_v60 }
 0x93f   :  { %v1485_v25 = vpop.f32.mrb[40].mxu1 }
 0x940   :  { %v1486_v26 = vadd.f32 %v1485_v25, %v1401_v21  ;;  %v1487_v27 = vpop.f32.mrb[41].mxu1 }
 0x941   :  { %v1488_v29 = vadd.f32 %v1487_v27, %v1405_v24  ;;  %v1489_v31 = vpop.f32.mrb[42].mxu1 }
 0x942   :  { %v1498_v32 = vmul.f32 0.044715, %v1486_v26  ;;  %v1490_v33 = vadd.f32 %v1489_v31, %v1401_v21  ;;  %v1491_v34 = vpop.f32.mrb[43].mxu1  ;;  %v1494_v59 = vmul.f32 0.5, %v1486_v26 }
 0x943   :  { %v1499_v30 = vmul.f32 0.044715, %v1488_v29  ;;  %v1492_v1 = vadd.f32 %v1491_v34, %v1405_v24  ;;  %v1495_v0 = vmul.f32 0.5, %v1488_v29 }
 0x944   :  { %v1502_v35 = vmul.f32 %v1498_v32, %v1486_v26  ;;  %v1500_v36 = vmul.f32 0.044715, %v1490_v33  ;;  %v1496_v62 = vmul.f32 0.5, %v1490_v33 }
 0x945   :  { %v1503_v2 = vmul.f32 %v1499_v30, %v1488_v29  ;;  %v1501_v37 = vmul.f32 0.044715, %v1492_v1  ;;  %v1497_v56 = vmul.f32 0.5, %v1492_v1 }
 0x946   :  { %v1506_v61 = vmul.f32 %v1502_v35, %v1486_v26  ;;  %v1504_v23 = vmul.f32 %v1500_v36, %v1490_v33 }
 0x947   :  { %v1507_v43 = vmul.f32 %v1503_v2, %v1488_v29  ;;  %v1505_v38 = vmul.f32 %v1501_v37, %v1492_v1 }
 0x948   :  { %v1510_v42 = vadd.f32 %v1506_v61, %v1486_v26  ;;  %v1508_v45 = vmul.f32 %v1504_v23, %v1490_v33 }
 0x949   :  { %v1509_v39 = vmul.f32 %v1505_v38, %v1492_v1  ;;  %v1511_v40 = vadd.f32 %v1507_v43, %v1488_v29 }
 0x94a   :  { %v1514_v44 = vmul.f32 0.7978846, %v1510_v42  ;;  %v1512_v47 = vadd.f32 %v1508_v45, %v1490_v33 }
 0x94b   :  { %v1513_v48 = vadd.f32 %v1509_v39, %v1492_v1  ;;  %v1515_v50 = vmul.f32 0.7978846, %v1511_v40 }
 0x94c   :  { %2063 = vtanh.f32 %v1514_v44  ;;  %v1516_v51 = vmul.f32 0.7978846, %v1512_v47 }
 0x94d   :  { %v1517_v52 = vmul.f32 0.7978846, %v1513_v48  ;;  %2065 = vtanh.f32 %v1515_v50 }
 0x94e   :  { %2067 = vtanh.f32 %v1516_v51 }
 0x94f   :  { %2069 = vtanh.f32 %v1517_v52 }
 0x956   :  { %v2064_v54 = vpop.eup %2063 }
 0x957   :  { %v2066_v55 = vpop.eup %2065  ;;  %v1522_v41 = vadd.f32 1.0, %v2064_v54 }
 0x958   :  { %v2068_v57 = vpop.eup %2067  ;;  %v1523_v46 = vadd.f32 1.0, %v2066_v55 }
 0x959   :  { %v2070_v58 = vpop.eup %2069  ;;  %v1524_v63 = vadd.f32 1.0, %v2068_v57  ;;  %v1526_v53 = vmul.f32 %v1522_v41, %v1494_v59 }
 0x95a   :  { %v1525_v4 = vadd.f32 1.0, %v2070_v58  ;;  %v1527_v60 = vmul.f32 %v1523_v46, %v1495_v0 }
 0x95b   :  { %v1528_v5 = vmul.f32 %v1524_v63, %v1496_v62 }
 0x95c   :  { %v1529_v7 = vmul.f32 %v1525_v4, %v1497_v56 }
 0x95d   :  { %v1530_v6 = vpack.c.bf16 %v1528_v5, %v1526_v53 }
 0x95e   :  { %v1531_v8 = vpack.c.bf16 %v1529_v7, %v1527_v60 }
 0x960   :  { %1699 = vmatprep.mubr.bf16.mxu0 %v1531_v8 }
 0x961   :  { %1700 = vmatmul.mubr.bf16.vlgmr.msra.gmra.mrb[32].mxu0 %v1530_v6 }
 0xa34   :  { %v1855_v9 = vpop.f32.mrb[32].mxu0 }
 0xa35   :  { %v1856_v3 = vpop.f32.mrb[33].mxu0 }
 0xa36   :  { %v1857_v11 = vadd.f32 %v1856_v3, %v1855_v9  ;;  %v1858_v12 = vpop.f32.mrb[34].mxu0 }
 0xa37   :  { %v1859_v13 = vpop.f32.mrb[35].mxu0 }
 0xa38   :  { %v1702_v14 = vadd.f32 %v1857_v11, %v1773_v10  ;;  %v1860_v15 = vadd.f32 %v1859_v13, %v1858_v12 }
 0xa3a   :  { %v1708_v49 = vadd.f32 %v1702_v14, %v2440_v22  ;;  %v1705_v16 = vadd.f32 %v1860_v15, %v1773_v10 }
 0xa3c   :  { %v1796_v17 = vpack.c.bf16 %v1708_v49, %v1708_v49  ;;  %v1709_v18 = vadd.f32 %v1705_v16, %v2443_v28 }
 0xa3e   :  { %1719 = vst.msk [vmem:[%s2563_s13] sm:$0xf] %vm1718_vm14, %v1796_v17  ;;  %v1797_v19 = vpack.c.bf16 %v1709_v18, %v1709_v18 }
 0xa40   :  { %1720 = vst.msk [vmem:[%s2563_s13 + $0x4] sm:$0xf] %vm1718_vm14, %v1797_v19 }

</bundles_post_ra>
